<compile_context>
chip_gen: v7x
topology: tpu7x:2x2x1
jax: 0.10.0
libtpu: 0.0.40
codegen_flags: <defaults>
</compile_context>

<pallas_src>
import jax
import jax.numpy as jnp
from jax import lax
from jax.experimental import pallas as pl
from jax.experimental.pallas import tpu as pltpu

EPS = 1e-5
_COLPAD = 8          # sublane-tile-aligned left pad inside the depthwise scratch


def _pick_tile_h(h, target=8):
    """Largest divisor of h that is <= target (output rows per grid step)."""
    for th in range(min(h, target), 0, -1):
        if h % th == 0:
            return th
    return 1


def bottleneck_kernel(x_ref, xh_ref, w1_ref, b1_ref, w2_ref, b2_ref,
                      w3_ref, b3_ref, o_ref, tp_ref):
    i = pl.program_id(1)                 # row-tile index
    nt = pl.num_programs(1)
    th, w = x_ref.shape[1], x_ref.shape[2]
    cin = x_ref.shape[3]
    cpe = w1_ref.shape[1]
    cout = w3_ref.shape[1]

    w1 = w1_ref[...]
    b1 = b1_ref[...]

    def conv1(xm):                       # (rows, cin) f32 -> (rows, cpe) f32
        t = jnp.dot(xm.astype(jnp.bfloat16), w1,
                    preferred_element_type=jnp.float32)
        return jnp.maximum(t + b1, 0.0)

    # ---- conv1 (1x1) + BN1 + ReLU on this tile's rows (also the residual) ----
    # NOTE: the (th, W, C) <-> (th*W, C) reshapes are free relayouts when W is
    # a multiple of 8 (sublane tile); other W still lowers correctly.
    xm = x_ref[...].reshape(th * w, cin)
    t_center = conv1(xm)

    # conv1 on the 1-row top/bottom halos.  At the image border the halo must
    # be *zero* (the 3x3 depthwise zero-pads its input, i.e. the conv1 output),
    # so mask out conv1(zero-row) = relu(b1) there.
    t_halo = conv1(xh_ref[...].reshape(2 * w, cin)).reshape(2, w, cpe)
    t_above = t_halo[0] * (i > 0).astype(jnp.float32)
    t_below = t_halo[1] * (i < nt - 1).astype(jnp.float32)

    # ---- stage conv1 outputs into the halo'd VMEM scratch ----
    # Only the two 1-wide column bands read by the dx=0 / dx=2 taps are
    # zeroed; the interior + halo rows are fully overwritten right after.
    zcol = jnp.zeros((th + 2, 1, cpe), jnp.float32)
    tp_ref[:, pl.ds(_COLPAD - 1, 1), :] = zcol
    tp_ref[:, pl.ds(_COLPAD + w, 1), :] = zcol
    tp_ref[pl.ds(0, 1), pl.ds(_COLPAD, w), :] = t_above.reshape(1, w, cpe)
    tp_ref[pl.ds(1, th), pl.ds(_COLPAD, w), :] = t_center.reshape(th, w, cpe)
    tp_ref[pl.ds(th + 1, 1), pl.ds(_COLPAD, w), :] = t_below.reshape(1, w, cpe)

    # ---- conv2: 3x3 depthwise, stride=1, padding=1 + BN2 + ReLU ----
    # Row-tile-sized accumulator (th rows) stays in vregs; 9 shifted-slice tap
    # reads + per-channel VPU MACs in f32.
    acc = jnp.zeros((th, w, cpe), jnp.float32)
    for dy in range(3):
        for dx in range(3):
            acc = acc + (tp_ref[pl.ds(dy, th), pl.ds(_COLPAD - 1 + dx, w), :]
                         * w2_ref[dy, dx, :])
    t2 = jnp.maximum(acc + b2_ref[0], 0.0)            # (th, w, cpe)

    # ---- conv3 (1x1) + BN3 + residual add + ReLU ----
    t3 = jnp.dot(t2.reshape(th * w, cpe).astype(jnp.bfloat16), w3_ref[...],
                 preferred_element_type=jnp.float32)
    out = jnp.maximum(t3 + b3_ref[...] + xm, 0.0)      # cout == cin residual
    o_ref[...] = out.reshape(1, th, w, cout).astype(o_ref.dtype)


def bottleneck_forward(x_nchw, kparams):
    """x_nchw: (N, Cin, H, W) float32. kparams: output of fold_params()."""
    w1, b1, w2, b2, w3, b3 = kparams
    n, cin, h, wd = x_nchw.shape
    cpe = w1.shape[1]
    cout = w3.shape[1]
    # Residual add (downsample=None, stride=1) requires Cout == Cin.
    assert cout == cin

    th = _pick_tile_h(h)
    nt = h // th

    # NCHW -> NHWC (channels on the TPU lane axis).  Channels are NOT padded
    # in HBM; block last-dims equal the full array dims so DMAs move only the
    # real bytes.
    x = jnp.transpose(x_nchw, (0, 2, 3, 1))            # (N, H, W, Cin)

    # One zero row above/below, then gather the single halo row each tile
    # needs into a tiny (N, nt, 2, W, Cin) side array (pure BlockSpec halo).
    xp = jnp.pad(x, ((0, 0), (1, 1), (0, 0), (0, 0)))
    above = xp[:, 0:h:th]                               # row above each tile
    below = xp[:, th + 1:h + 2:th]                      # row below each tile
    xh = jnp.stack([above, below], axis=2)              # (N, nt, 2, W, Cin)

    flops = int(2 * n * h * wd * (cin * cpe + 9 * cpe + cpe * cout))
    bytes_accessed = int(x.size * 4 + xh.size * 4 + n * h * wd * cout * 4
                         + w1.size * 2 + w3.size * 2 + w2.size * 4
                         + (b1.size + b2.size + b3.size) * 4)

    out = pl.pallas_call(
        bottleneck_kernel,
        out_shape=jax.ShapeDtypeStruct((n, h, wd, cout), jnp.float32),
        grid=(n, nt),
        in_specs=[
            pl.BlockSpec((1, th, wd, cin), lambda b, i: (b, i, 0, 0)),
            pl.BlockSpec((1, 1, 2, wd, cin), lambda b, i: (b, i, 0, 0, 0)),
            pl.BlockSpec((cin, cpe), lambda b, i: (0, 0)),
            pl.BlockSpec((1, cpe), lambda b, i: (0, 0)),
            pl.BlockSpec((3, 3, cpe), lambda b, i: (0, 0, 0)),
            pl.BlockSpec((1, cpe), lambda b, i: (0, 0)),
            pl.BlockSpec((cpe, cout), lambda b, i: (0, 0)),
            pl.BlockSpec((1, cout), lambda b, i: (0, 0)),
        ],
        out_specs=pl.BlockSpec((1, th, wd, cout), lambda b, i: (b, i, 0, 0)),
        scratch_shapes=[
            pltpu.VMEM((th + 2, wd + 2 * _COLPAD, cpe), jnp.float32)],
        compiler_params=pltpu.CompilerParams(
            dimension_semantics=("parallel", "parallel")),
        cost_estimate=pl.CostEstimate(
            flops=flops, transcendentals=0, bytes_accessed=bytes_accessed),
    )(x, xh, w1, b1, w2, b2, w3, b3)

    return jnp.transpose(out, (0, 3, 1, 2))             # NHWC -> NCHW


def make_params(key, inplanes, planes, expansion):
    """Deterministic synthetic parameters in PyTorch layout."""
    cexp = inplanes * expansion
    ks = jax.random.split(key, 15)
    p = {
        "w1": jax.random.normal(ks[0], (cexp, inplanes, 1, 1), jnp.float32) * 0.2,
        "w2": jax.random.normal(ks[1], (cexp, 1, 3, 3), jnp.float32) * 0.2,
        "w3": jax.random.normal(ks[2], (planes, cexp, 1, 1), jnp.float32) * 0.2,
    }
    for idx, (i, c) in enumerate(zip((1, 2, 3), (cexp, cexp, planes))):
        base = 3 + 4 * idx
        p[f"g{i}"] = 1.0 + 0.1 * jax.random.normal(ks[base + 0], (c,), jnp.float32)
        p[f"b{i}"] = 0.1 * jax.random.normal(ks[base + 1], (c,), jnp.float32)
        p[f"m{i}"] = 0.05 * jax.random.normal(ks[base + 2], (c,), jnp.float32)
        p[f"v{i}"] = 0.5 + 0.5 * jnp.abs(
            jax.random.normal(ks[base + 3], (c,), jnp.float32))
    return p


def fold_params(p):
    """PyTorch-layout params -> kernel layout.

    Folds eval-mode BatchNorm into the convolutions (only the bias adds remain
    inside the kernel); 1x1 weights are cast to bfloat16 (MXU operands), the
    depthwise weight stays f32 (VPU).  No channel padding.
    """
    def scale_bias(g, b, m, v):
        s = g / jnp.sqrt(v + EPS)
        return s, b - m * s

    s1, b1 = scale_bias(p["g1"], p["b1"], p["m1"], p["v1"])
    s2, b2 = scale_bias(p["g2"], p["b2"], p["m2"], p["v2"])
    s3, b3 = scale_bias(p["g3"], p["b3"], p["m3"], p["v3"])

    w1 = (jnp.transpose(p["w1"][:, :, 0, 0], (1, 0)) * s1[None, :]
          ).astype(jnp.bfloat16)                                   # (Cin, Cexp)
    w2 = jnp.transpose(p["w2"][:, 0, :, :], (1, 2, 0)) * s2[None, None, :]  # (3,3,Cexp)
    w3 = (jnp.transpose(p["w3"][:, :, 0, 0], (1, 0)) * s3[None, :]
          ).astype(jnp.bfloat16)                                   # (Cexp, Cout)

    b1 = b1.reshape(1, -1).astype(jnp.float32)
    b2 = b2.reshape(1, -1).astype(jnp.float32)
    b3 = b3.reshape(1, -1).astype(jnp.float32)
    return (w1, b1, w2, b2, w3, b3)


def reference_forward(x, p, cexp):
    """Plain-JAX NCHW reference mirroring the PyTorch module (eval-mode BN)."""
    def bn(y, g, b, m, v):
        return ((y - m[None, :, None, None])
                / jnp.sqrt(v + EPS)[None, :, None, None]
                * g[None, :, None, None] + b[None, :, None, None])

    dn = ("NCHW", "OIHW", "NCHW")
    out = lax.conv_general_dilated(x, p["w1"], (1, 1), "VALID",
                                   dimension_numbers=dn)
    out = jnp.maximum(bn(out, p["g1"], p["b1"], p["m1"], p["v1"]), 0.0)
    out = lax.conv_general_dilated(out, p["w2"], (1, 1), ((1, 1), (1, 1)),
                                   dimension_numbers=dn,
                                   feature_group_count=cexp)
    out = jnp.maximum(bn(out, p["g2"], p["b2"], p["m2"], p["v2"]), 0.0)
    out = lax.conv_general_dilated(out, p["w3"], (1, 1), "VALID",
                                   dimension_numbers=dn)
    out = bn(out, p["g3"], p["b3"], p["m3"], p["v3"])
    return jnp.maximum(out + x, 0.0)


if __name__ == "__main__":
    N, inplanes, planes, H, W, expansion = 2, 8, 8, 16, 16, 2
    key = jax.random.PRNGKey(0)
    kx, kp = jax.random.split(key)
    x = jax.random.normal(kx, (N, inplanes, H, W), jnp.float32)

    params_pt = make_params(kp, inplanes, planes, expansion)
    kparams = fold_params(params_pt)

    out = bottleneck_forward(x, kparams)
    out = jax.block_until_ready(out)

    ref = reference_forward(x, params_pt, inplanes * expansion)
    assert out.shape == (N, planes, H, W)
    # bf16 MXU operands for the 1x1 convs -> relaxed tolerance vs the f32 ref.
    max_err = float(jnp.max(jnp.abs(out - ref)))
    assert jnp.allclose(out, ref, atol=1e-1, rtol=1e-2), max_err
    print("KERNEL_OK")
</pallas_src>

<mosaic_0001>
module attributes {stable_mosaic.version = 11 : i64} {
  func.func @bottleneck_kernel(%arg0: i32, %arg1: i32, %arg2: memref<1x8x16x8xf32, #tpu.memory_space<vmem>>, %arg3: memref<1x1x2x16x8xf32, #tpu.memory_space<vmem>>, %arg4: memref<8x16xbf16, #tpu.memory_space<vmem>>, %arg5: memref<1x16xf32, #tpu.memory_space<vmem>>, %arg6: memref<3x3x16xf32, #tpu.memory_space<vmem>>, %arg7: memref<1x16xf32, #tpu.memory_space<vmem>>, %arg8: memref<16x8xbf16, #tpu.memory_space<vmem>>, %arg9: memref<1x8xf32, #tpu.memory_space<vmem>>, %arg10: memref<1x8x16x8xf32, #tpu.memory_space<vmem>>, %arg11: memref<10x32x16xf32, #tpu.memory_space<vmem>>) attributes {dimension_semantics = [#tpu.dimension_semantics<parallel>, #tpu.dimension_semantics<parallel>], iteration_bounds = array<i64: 2, 2>, scalar_prefetch = 0 : i64, scratch_operands = 1 : i64, tpu.core_type = #tpu.core_type<tc>, window_params = [{transform_indices = @transform_0, window_bounds = array<i64: 1, 8, 16, 8>}, {transform_indices = @transform_1, window_bounds = array<i64: 1, 1, 2, 16, 8>}, {pipeline_mode = #tpu.pipeline_mode<synchronous>, transform_indices = @transform_2, window_bounds = array<i64: 8, 16>}, {pipeline_mode = #tpu.pipeline_mode<synchronous>, transform_indices = @transform_3, window_bounds = array<i64: 1, 16>}, {pipeline_mode = #tpu.pipeline_mode<synchronous>, transform_indices = @transform_4, window_bounds = array<i64: 3, 3, 16>}, {pipeline_mode = #tpu.pipeline_mode<synchronous>, transform_indices = @transform_5, window_bounds = array<i64: 1, 16>}, {pipeline_mode = #tpu.pipeline_mode<synchronous>, transform_indices = @transform_6, window_bounds = array<i64: 16, 8>}, {pipeline_mode = #tpu.pipeline_mode<synchronous>, transform_indices = @transform_7, window_bounds = array<i64: 1, 8>}, {transform_indices = @transform_8, window_bounds = array<i64: 1, 8, 16, 8>}]} {
    %c0 = arith.constant 0 : index
    %c0_0 = arith.constant 0 : index
    %0 = vector.load %arg4[%c0, %c0_0] : memref<8x16xbf16, #tpu.memory_space<vmem>>, vector<8x16xbf16>
    %c0_1 = arith.constant 0 : index
    %c0_2 = arith.constant 0 : index
    %1 = vector.load %arg5[%c0_1, %c0_2] : memref<1x16xf32, #tpu.memory_space<vmem>>, vector<1x16xf32>
    %c0_3 = arith.constant 0 : index
    %c0_4 = arith.constant 0 : index
    %c0_5 = arith.constant 0 : index
    %c0_6 = arith.constant 0 : index
    %2 = vector.load %arg2[%c0_3, %c0_4, %c0_5, %c0_6] : memref<1x8x16x8xf32, #tpu.memory_space<vmem>>, vector<1x8x16x8xf32>
    %3 = vector.shape_cast %2 : vector<1x8x16x8xf32> to vector<128x8xf32>
    %4 = arith.truncf %3 : vector<128x8xf32> to vector<128x8xbf16>
    %cst = arith.constant dense<0.000000e+00> : vector<128x16xf32>
    %5 = tpu.matmul %4, %0, %cst {dimension_numbers = #tpu.dot_dimension_numbers<[1], [0], [0], [1], [0, 0, 1, 1], [], []>} : vector<128x8xbf16>, vector<8x16xbf16>, vector<128x16xf32> -> vector<128x16xf32>
    %6 = vector.broadcast %1 : vector<1x16xf32> to vector<128x16xf32>
    %7 = arith.addf %5, %6 : vector<128x16xf32>
    %cst_7 = arith.constant 0.000000e+00 : f32
    %8 = vector.broadcast %cst_7 : f32 to vector<128x16xf32>
    %9 = arith.maximumf %7, %8 : vector<128x16xf32>
    %c0_8 = arith.constant 0 : index
    %c0_9 = arith.constant 0 : index
    %c0_10 = arith.constant 0 : index
    %c0_11 = arith.constant 0 : index
    %c0_12 = arith.constant 0 : index
    %10 = vector.load %arg3[%c0_8, %c0_9, %c0_10, %c0_11, %c0_12] : memref<1x1x2x16x8xf32, #tpu.memory_space<vmem>>, vector<1x1x2x16x8xf32>
    %11 = vector.shape_cast %10 : vector<1x1x2x16x8xf32> to vector<32x8xf32>
    %12 = arith.truncf %11 : vector<32x8xf32> to vector<32x8xbf16>
    %cst_13 = arith.constant dense<0.000000e+00> : vector<32x16xf32>
    %13 = tpu.matmul %12, %0, %cst_13 {dimension_numbers = #tpu.dot_dimension_numbers<[1], [0], [0], [1], [0, 0, 1, 1], [], []>} : vector<32x8xbf16>, vector<8x16xbf16>, vector<32x16xf32> -> vector<32x16xf32>
    %14 = vector.broadcast %1 : vector<1x16xf32> to vector<32x16xf32>
    %15 = arith.addf %13, %14 : vector<32x16xf32>
    %cst_14 = arith.constant 0.000000e+00 : f32
    %16 = vector.broadcast %cst_14 : f32 to vector<32x16xf32>
    %17 = arith.maximumf %15, %16 : vector<32x16xf32>
    %18 = vector.shape_cast %17 : vector<32x16xf32> to vector<2x16x16xf32>
    %19 = vector.extract_strided_slice %18 {offsets = [0, 0, 0], sizes = [1, 16, 16], strides = [1, 1, 1]} : vector<2x16x16xf32> to vector<1x16x16xf32>
    %20 = vector.shape_cast %19 : vector<1x16x16xf32> to vector<16x16xf32>
    %c0_i32 = arith.constant 0 : i32
    %21 = arith.cmpi sgt, %arg1, %c0_i32 : i32
    %22 = arith.extui %21 : i1 to i32
    %23 = arith.sitofp %22 : i32 to f32
    %24 = vector.broadcast %23 : f32 to vector<16x16xf32>
    %25 = arith.mulf %20, %24 : vector<16x16xf32>
    %26 = vector.extract_strided_slice %18 {offsets = [1, 0, 0], sizes = [1, 16, 16], strides = [1, 1, 1]} : vector<2x16x16xf32> to vector<1x16x16xf32>
    %27 = vector.shape_cast %26 : vector<1x16x16xf32> to vector<16x16xf32>
    %c1_i32 = arith.constant 1 : i32
    %28 = arith.cmpi slt, %arg1, %c1_i32 : i32
    %29 = arith.extui %28 : i1 to i32
    %30 = arith.sitofp %29 : i32 to f32
    %31 = vector.broadcast %30 : f32 to vector<16x16xf32>
    %32 = arith.mulf %27, %31 : vector<16x16xf32>
    %cst_15 = arith.constant 0.000000e+00 : f32
    %33 = vector.broadcast %cst_15 : f32 to vector<10x1x16xf32>
    %c0_16 = arith.constant 0 : index
    %c7 = arith.constant 7 : index
    %c0_17 = arith.constant 0 : index
    %34 = vector.load %arg11[%c0_16, %c7, %c0_17] : memref<10x32x16xf32, #tpu.memory_space<vmem>>, vector<10x1x16xf32>
    tpu.vector_store %arg11[%c0_16, %c7, %c0_17], %33 {strides = array<i32>} : memref<10x32x16xf32, #tpu.memory_space<vmem>>, vector<10x1x16xf32>,
    %c0_18 = arith.constant 0 : index
    %c24 = arith.constant 24 : index
    %c0_19 = arith.constant 0 : index
    %35 = vector.load %arg11[%c0_18, %c24, %c0_19] : memref<10x32x16xf32, #tpu.memory_space<vmem>>, vector<10x1x16xf32>
    tpu.vector_store %arg11[%c0_18, %c24, %c0_19], %33 {strides = array<i32>} : memref<10x32x16xf32, #tpu.memory_space<vmem>>, vector<10x1x16xf32>,
    %36 = vector.shape_cast %25 : vector<16x16xf32> to vector<1x16x16xf32>
    %c0_20 = arith.constant 0 : index
    %c8 = arith.constant 8 : index
    %c0_21 = arith.constant 0 : index
    %37 = vector.load %arg11[%c0_20, %c8, %c0_21] : memref<10x32x16xf32, #tpu.memory_space<vmem>>, vector<1x16x16xf32>
    tpu.vector_store %arg11[%c0_20, %c8, %c0_21], %36 {strides = array<i32>} : memref<10x32x16xf32, #tpu.memory_space<vmem>>, vector<1x16x16xf32>,
    %38 = vector.shape_cast %9 : vector<128x16xf32> to vector<8x16x16xf32>
    %c1 = arith.constant 1 : index
    %c8_22 = arith.constant 8 : index
    %c0_23 = arith.constant 0 : index
    %39 = vector.load %arg11[%c1, %c8_22, %c0_23] : memref<10x32x16xf32, #tpu.memory_space<vmem>>, vector<8x16x16xf32>
    tpu.vector_store %arg11[%c1, %c8_22, %c0_23], %38 {strides = array<i32>} : memref<10x32x16xf32, #tpu.memory_space<vmem>>, vector<8x16x16xf32>,
    %40 = vector.shape_cast %32 : vector<16x16xf32> to vector<1x16x16xf32>
    %c9 = arith.constant 9 : index
    %c8_24 = arith.constant 8 : index
    %c0_25 = arith.constant 0 : index
    %41 = vector.load %arg11[%c9, %c8_24, %c0_25] : memref<10x32x16xf32, #tpu.memory_space<vmem>>, vector<1x16x16xf32>
    tpu.vector_store %arg11[%c9, %c8_24, %c0_25], %40 {strides = array<i32>} : memref<10x32x16xf32, #tpu.memory_space<vmem>>, vector<1x16x16xf32>,
    %cst_26 = arith.constant 0.000000e+00 : f32
    %42 = vector.broadcast %cst_26 : f32 to vector<8x16x16xf32>
    %c0_27 = arith.constant 0 : index
    %c7_28 = arith.constant 7 : index
    %c0_29 = arith.constant 0 : index
    %43 = vector.load %arg11[%c0_27, %c7_28, %c0_29] : memref<10x32x16xf32, #tpu.memory_space<vmem>>, vector<8x16x16xf32>
    %c0_30 = arith.constant 0 : index
    %c0_31 = arith.constant 0 : index
    %c0_32 = arith.constant 0 : index
    %44 = vector.load %arg6[%c0_30, %c0_31, %c0_32] : memref<3x3x16xf32, #tpu.memory_space<vmem>>, vector<1x1x16xf32>
    %45 = vector.shape_cast %44 : vector<1x1x16xf32> to vector<16xf32>
    %46 = vector.shape_cast %45 : vector<16xf32> to vector<1x1x16xf32>
    %47 = vector.broadcast %46 : vector<1x1x16xf32> to vector<8x16x16xf32>
    %48 = arith.mulf %43, %47 : vector<8x16x16xf32>
    %49 = arith.addf %42, %48 : vector<8x16x16xf32>
    %c0_33 = arith.constant 0 : index
    %c8_34 = arith.constant 8 : index
    %c0_35 = arith.constant 0 : index
    %50 = vector.load %arg11[%c0_33, %c8_34, %c0_35] : memref<10x32x16xf32, #tpu.memory_space<vmem>>, vector<8x16x16xf32>
    %c0_36 = arith.constant 0 : index
    %c1_37 = arith.constant 1 : index
    %c0_38 = arith.constant 0 : index
    %51 = vector.load %arg6[%c0_36, %c1_37, %c0_38] : memref<3x3x16xf32, #tpu.memory_space<vmem>>, vector<1x1x16xf32>
    %52 = vector.shape_cast %51 : vector<1x1x16xf32> to vector<16xf32>
    %53 = vector.shape_cast %52 : vector<16xf32> to vector<1x1x16xf32>
    %54 = vector.broadcast %53 : vector<1x1x16xf32> to vector<8x16x16xf32>
    %55 = arith.mulf %50, %54 : vector<8x16x16xf32>
    %56 = arith.addf %49, %55 : vector<8x16x16xf32>
    %c0_39 = arith.constant 0 : index
    %c9_40 = arith.constant 9 : index
    %c0_41 = arith.constant 0 : index
    %57 = vector.load %arg11[%c0_39, %c9_40, %c0_41] : memref<10x32x16xf32, #tpu.memory_space<vmem>>, vector<8x16x16xf32>
    %c0_42 = arith.constant 0 : index
    %c2 = arith.constant 2 : index
    %c0_43 = arith.constant 0 : index
    %58 = vector.load %arg6[%c0_42, %c2, %c0_43] : memref<3x3x16xf32, #tpu.memory_space<vmem>>, vector<1x1x16xf32>
    %59 = vector.shape_cast %58 : vector<1x1x16xf32> to vector<16xf32>
    %60 = vector.shape_cast %59 : vector<16xf32> to vector<1x1x16xf32>
    %61 = vector.broadcast %60 : vector<1x1x16xf32> to vector<8x16x16xf32>
    %62 = arith.mulf %57, %61 : vector<8x16x16xf32>
    %63 = arith.addf %56, %62 : vector<8x16x16xf32>
    %c1_44 = arith.constant 1 : index
    %c7_45 = arith.constant 7 : index
    %c0_46 = arith.constant 0 : index
    %64 = vector.load %arg11[%c1_44, %c7_45, %c0_46] : memref<10x32x16xf32, #tpu.memory_space<vmem>>, vector<8x16x16xf32>
    %c1_47 = arith.constant 1 : index
    %c0_48 = arith.constant 0 : index
    %c0_49 = arith.constant 0 : index
    %65 = vector.load %arg6[%c1_47, %c0_48, %c0_49] : memref<3x3x16xf32, #tpu.memory_space<vmem>>, vector<1x1x16xf32>
    %66 = vector.shape_cast %65 : vector<1x1x16xf32> to vector<16xf32>
    %67 = vector.shape_cast %66 : vector<16xf32> to vector<1x1x16xf32>
    %68 = vector.broadcast %67 : vector<1x1x16xf32> to vector<8x16x16xf32>
    %69 = arith.mulf %64, %68 : vector<8x16x16xf32>
    %70 = arith.addf %63, %69 : vector<8x16x16xf32>
    %c1_50 = arith.constant 1 : index
    %c8_51 = arith.constant 8 : index
    %c0_52 = arith.constant 0 : index
    %71 = vector.load %arg11[%c1_50, %c8_51, %c0_52] : memref<10x32x16xf32, #tpu.memory_space<vmem>>, vector<8x16x16xf32>
    %c1_53 = arith.constant 1 : index
    %c1_54 = arith.constant 1 : index
    %c0_55 = arith.constant 0 : index
    %72 = vector.load %arg6[%c1_53, %c1_54, %c0_55] : memref<3x3x16xf32, #tpu.memory_space<vmem>>, vector<1x1x16xf32>
    %73 = vector.shape_cast %72 : vector<1x1x16xf32> to vector<16xf32>
    %74 = vector.shape_cast %73 : vector<16xf32> to vector<1x1x16xf32>
    %75 = vector.broadcast %74 : vector<1x1x16xf32> to vector<8x16x16xf32>
    %76 = arith.mulf %71, %75 : vector<8x16x16xf32>
    %77 = arith.addf %70, %76 : vector<8x16x16xf32>
    %c1_56 = arith.constant 1 : index
    %c9_57 = arith.constant 9 : index
    %c0_58 = arith.constant 0 : index
    %78 = vector.load %arg11[%c1_56, %c9_57, %c0_58] : memref<10x32x16xf32, #tpu.memory_space<vmem>>, vector<8x16x16xf32>
    %c1_59 = arith.constant 1 : index
    %c2_60 = arith.constant 2 : index
    %c0_61 = arith.constant 0 : index
    %79 = vector.load %arg6[%c1_59, %c2_60, %c0_61] : memref<3x3x16xf32, #tpu.memory_space<vmem>>, vector<1x1x16xf32>
    %80 = vector.shape_cast %79 : vector<1x1x16xf32> to vector<16xf32>
    %81 = vector.shape_cast %80 : vector<16xf32> to vector<1x1x16xf32>
    %82 = vector.broadcast %81 : vector<1x1x16xf32> to vector<8x16x16xf32>
    %83 = arith.mulf %78, %82 : vector<8x16x16xf32>
    %84 = arith.addf %77, %83 : vector<8x16x16xf32>
    %c2_62 = arith.constant 2 : index
    %c7_63 = arith.constant 7 : index
    %c0_64 = arith.constant 0 : index
    %85 = vector.load %arg11[%c2_62, %c7_63, %c0_64] : memref<10x32x16xf32, #tpu.memory_space<vmem>>, vector<8x16x16xf32>
    %c2_65 = arith.constant 2 : index
    %c0_66 = arith.constant 0 : index
    %c0_67 = arith.constant 0 : index
    %86 = vector.load %arg6[%c2_65, %c0_66, %c0_67] : memref<3x3x16xf32, #tpu.memory_space<vmem>>, vector<1x1x16xf32>
    %87 = vector.shape_cast %86 : vector<1x1x16xf32> to vector<16xf32>
    %88 = vector.shape_cast %87 : vector<16xf32> to vector<1x1x16xf32>
    %89 = vector.broadcast %88 : vector<1x1x16xf32> to vector<8x16x16xf32>
    %90 = arith.mulf %85, %89 : vector<8x16x16xf32>
    %91 = arith.addf %84, %90 : vector<8x16x16xf32>
    %c2_68 = arith.constant 2 : index
    %c8_69 = arith.constant 8 : index
    %c0_70 = arith.constant 0 : index
    %92 = vector.load %arg11[%c2_68, %c8_69, %c0_70] : memref<10x32x16xf32, #tpu.memory_space<vmem>>, vector<8x16x16xf32>
    %c2_71 = arith.constant 2 : index
    %c1_72 = arith.constant 1 : index
    %c0_73 = arith.constant 0 : index
    %93 = vector.load %arg6[%c2_71, %c1_72, %c0_73] : memref<3x3x16xf32, #tpu.memory_space<vmem>>, vector<1x1x16xf32>
    %94 = vector.shape_cast %93 : vector<1x1x16xf32> to vector<16xf32>
    %95 = vector.shape_cast %94 : vector<16xf32> to vector<1x1x16xf32>
    %96 = vector.broadcast %95 : vector<1x1x16xf32> to vector<8x16x16xf32>
    %97 = arith.mulf %92, %96 : vector<8x16x16xf32>
    %98 = arith.addf %91, %97 : vector<8x16x16xf32>
    %c2_74 = arith.constant 2 : index
    %c9_75 = arith.constant 9 : index
    %c0_76 = arith.constant 0 : index
    %99 = vector.load %arg11[%c2_74, %c9_75, %c0_76] : memref<10x32x16xf32, #tpu.memory_space<vmem>>, vector<8x16x16xf32>
    %c2_77 = arith.constant 2 : index
    %c2_78 = arith.constant 2 : index
    %c0_79 = arith.constant 0 : index
    %100 = vector.load %arg6[%c2_77, %c2_78, %c0_79] : memref<3x3x16xf32, #tpu.memory_space<vmem>>, vector<1x1x16xf32>
    %101 = vector.shape_cast %100 : vector<1x1x16xf32> to vector<16xf32>
    %102 = vector.shape_cast %101 : vector<16xf32> to vector<1x1x16xf32>
    %103 = vector.broadcast %102 : vector<1x1x16xf32> to vector<8x16x16xf32>
    %104 = arith.mulf %99, %103 : vector<8x16x16xf32>
    %105 = arith.addf %98, %104 : vector<8x16x16xf32>
    %c0_80 = arith.constant 0 : index
    %c0_81 = arith.constant 0 : index
    %106 = vector.load %arg7[%c0_80, %c0_81] : memref<1x16xf32, #tpu.memory_space<vmem>>, vector<1x16xf32>
    %107 = vector.shape_cast %106 : vector<1x16xf32> to vector<16xf32>
    %108 = vector.shape_cast %107 : vector<16xf32> to vector<1x1x16xf32>
    %109 = vector.broadcast %108 : vector<1x1x16xf32> to vector<8x16x16xf32>
    %110 = arith.addf %105, %109 : vector<8x16x16xf32>
    %cst_82 = arith.constant 0.000000e+00 : f32
    %111 = vector.broadcast %cst_82 : f32 to vector<8x16x16xf32>
    %112 = arith.maximumf %110, %111 : vector<8x16x16xf32>
    %113 = vector.shape_cast %112 : vector<8x16x16xf32> to vector<128x16xf32>
    %114 = arith.truncf %113 : vector<128x16xf32> to vector<128x16xbf16>
    %c0_83 = arith.constant 0 : index
    %c0_84 = arith.constant 0 : index
    %115 = vector.load %arg8[%c0_83, %c0_84] : memref<16x8xbf16, #tpu.memory_space<vmem>>, vector<16x8xbf16>
    %cst_85 = arith.constant dense<0.000000e+00> : vector<128x8xf32>
    %116 = tpu.matmul %114, %115, %cst_85 {dimension_numbers = #tpu.dot_dimension_numbers<[1], [0], [0], [1], [0, 0, 1, 1], [], []>} : vector<128x16xbf16>, vector<16x8xbf16>, vector<128x8xf32> -> vector<128x8xf32>
    %c0_86 = arith.constant 0 : index
    %c0_87 = arith.constant 0 : index
    %117 = vector.load %arg9[%c0_86, %c0_87] : memref<1x8xf32, #tpu.memory_space<vmem>>, vector<1x8xf32>
    %118 = vector.broadcast %117 : vector<1x8xf32> to vector<128x8xf32>
    %119 = arith.addf %116, %118 : vector<128x8xf32>
    %120 = arith.addf %119, %3 : vector<128x8xf32>
    %cst_88 = arith.constant 0.000000e+00 : f32
    %121 = vector.broadcast %cst_88 : f32 to vector<128x8xf32>
    %122 = arith.maximumf %120, %121 : vector<128x8xf32>
    %123 = vector.shape_cast %122 : vector<128x8xf32> to vector<1x8x16x8xf32>
    %c0_89 = arith.constant 0 : index
    %c0_90 = arith.constant 0 : index
    %c0_91 = arith.constant 0 : index
    %c0_92 = arith.constant 0 : index
    %124 = vector.load %arg10[%c0_89, %c0_90, %c0_91, %c0_92] : memref<1x8x16x8xf32, #tpu.memory_space<vmem>>, vector<1x8x16x8xf32>
    tpu.vector_store %arg10[%c0_89, %c0_90, %c0_91, %c0_92], %123 {strides = array<i32>} : memref<1x8x16x8xf32, #tpu.memory_space<vmem>>, vector<1x8x16x8xf32>,
    return
  }
  func.func @transform_0(%arg0: i32, %arg1: i32) -> (i32, i32, i32, i32) {
    %c0_i32 = arith.constant 0 : i32
    %c0_i32_0 = arith.constant 0 : i32
    %c0_i32_1 = arith.constant 0 : i32
    return %arg0, %arg1, %c0_i32, %c0_i32_0 : i32, i32, i32, i32
  }
  func.func @transform_1(%arg0: i32, %arg1: i32) -> (i32, i32, i32, i32, i32) {
    %c0_i32 = arith.constant 0 : i32
    %c0_i32_0 = arith.constant 0 : i32
    %c0_i32_1 = arith.constant 0 : i32
    %c0_i32_2 = arith.constant 0 : i32
    return %arg0, %arg1, %c0_i32, %c0_i32_0, %c0_i32_1 : i32, i32, i32, i32, i32
  }
  func.func @transform_2(%arg0: i32, %arg1: i32) -> (i32, i32) {
    %c0_i32 = arith.constant 0 : i32
    %c0_i32_0 = arith.constant 0 : i32
    %c0_i32_1 = arith.constant 0 : i32
    return %c0_i32, %c0_i32_0 : i32, i32
  }
  func.func @transform_3(%arg0: i32, %arg1: i32) -> (i32, i32) {
    %c0_i32 = arith.constant 0 : i32
    %c0_i32_0 = arith.constant 0 : i32
    %c0_i32_1 = arith.constant 0 : i32
    return %c0_i32, %c0_i32_0 : i32, i32
  }
  func.func @transform_4(%arg0: i32, %arg1: i32) -> (i32, i32, i32) {
    %c0_i32 = arith.constant 0 : i32
    %c0_i32_0 = arith.constant 0 : i32
    %c0_i32_1 = arith.constant 0 : i32
    %c0_i32_2 = arith.constant 0 : i32
    return %c0_i32, %c0_i32_0, %c0_i32_1 : i32, i32, i32
  }
  func.func @transform_5(%arg0: i32, %arg1: i32) -> (i32, i32) {
    %c0_i32 = arith.constant 0 : i32
    %c0_i32_0 = arith.constant 0 : i32
    %c0_i32_1 = arith.constant 0 : i32
    return %c0_i32, %c0_i32_0 : i32, i32
  }
  func.func @transform_6(%arg0: i32, %arg1: i32) -> (i32, i32) {
    %c0_i32 = arith.constant 0 : i32
    %c0_i32_0 = arith.constant 0 : i32
    %c0_i32_1 = arith.constant 0 : i32
    return %c0_i32, %c0_i32_0 : i32, i32
  }
  func.func @transform_7(%arg0: i32, %arg1: i32) -> (i32, i32) {
    %c0_i32 = arith.constant 0 : i32
    %c0_i32_0 = arith.constant 0 : i32
    %c0_i32_1 = arith.constant 0 : i32
    return %c0_i32, %c0_i32_0 : i32, i32
  }
  func.func @transform_8(%arg0: i32, %arg1: i32) -> (i32, i32, i32, i32) {
    %c0_i32 = arith.constant 0 : i32
    %c0_i32_0 = arith.constant 0 : i32
    %c0_i32_1 = arith.constant 0 : i32
    return %arg0, %arg1, %c0_i32, %c0_i32_0 : i32, i32, i32, i32
  }
}

</mosaic_0001>

<bundles_post_ra>
// kernel: tpu_custom_call.1
= control target key start
LH: loop header
LB: loop body
LE: loop exit
PB: predicated region body
PF: predicated region fallthrough
CT: control target
= control target key end

     0   :  { %s1775_s27 = smov 0   ;;  %s1777_s28 = smov 0   ;;  %s2445_s0 = inlined_call_operand.vmem [shape: f32[2,16,16,8], index: 0, kind: input, shape index: {}]   ;;  %s2446_s1 = inlined_call_operand.vmem [shape: f32[2,2,2,16,8], index: 1, kind: input, shape index: {}]   ;;  %s2447_s2 = inlined_call_operand.vmem [shape: bf16[8,16], index: 2, kind: input, shape index: {}]   ;;  %s2448_s3 = inlined_call_operand.vmem [shape: f32[1,16], index: 3, kind: input, shape index: {}]   ;;  %s2449_s4 = inlined_call_operand.vmem [shape: f32[3,3,16], index: 4, kind: input, shape index: {}]   ;;  %s2450_s5 = inlined_call_operand.vmem [shape: f32[1,16], index: 5, kind: input, shape index: {}]   ;;  %s2451_s6 = inlined_call_operand.vmem [shape: bf16[16,8], index: 6, kind: input, shape index: {}]   ;;  %s2452_s7 = inlined_call_operand.vmem [shape: f32[1,8], index: 7, kind: input, shape index: {}]   ;;  %s2453_s8 = inlined_call_operand.vmem [shape: f32[2,16,16,8], index: 8, kind: output, shape index: {}]  }
   0x1   :  { %s1779_s29 = smov 0   ;;  %s1781_s30 = smov 0  }
   0x2   :  { %s1783_s9 = smov 0  }
   0x3 LB: > { %s27_s10 = sadd.s32 1, %s1719_s29  ;;  %s30_s11 = sadd.s32 1, %s1723_s30  ;;  %s1727_s9 = sphi %s1783_s9, %s18_s9   ;;  %s1723_s30 = sphi %s1781_s30, %s2457_s30   ;;  %s1719_s29 = sphi %s1779_s29, %s2456_s29   ;;  %s1715_s28 = sphi %s1777_s28, %s2455_s28   ;;  %s1711_s27 = sphi %s1775_s27, %s2454_s27  }
   0x4   : > { %p28_p0 = scmp.ge.s32.totalorder %s27_s10, 2  ;;  %p1515_p1 = scmp.ge.s32.totalorder %s1727_s9, 1 }
   0x5   : > { %p300_p2 = scmp.lt.s32.totalorder %s1727_s9, 5 }
   0x6   : > { %s2459_s10 = smov (%p28_p0, %s27_s10), 0  ;;  %s2461_s11 = smov (!%p28_p0, %s30_s11), %s1723_s30 }
   0x7   : > { %p301_p3 = pnand %p1515_p1, %p300_p2  ;;  %p32_p4 = scmp.ge.s32.totalorder %s2461_s11, 2 }
   0x8   : > { %v385_v0 = vld [vmem:[%s2447_s2] sm:$0xf] (!%p301_p3)  ;;  %vm442_vm0 = vcmask (!%p301_p3), 1043456   ;;  %s1516_s14 = sshll.u32 (!%p301_p3), %s1711_s27, 3  ;;  %p354_p5 = scmp.lt.s32.totalorder (!%p301_p3), %s1715_s28, 1  ;;  %vm417_vm1 = vcmask (!%p301_p3), 64512  }
   0x9   : > { %s2463_s11 = smov (%p32_p4, %s2461_s11), 0  ;;  %304 = sbr.rel (%p301_p3) target bundleno = 565 (0x235), region = 52 }
   0xa   : > { %1630 = vmatprep.subr.msk.bf16.mxu1 (!%p301_p3), %vm442_vm0, %v385_v0  ;;  %1629 = vmatprep.subr.msk.bf16.mxu0 (!%p301_p3), %vm442_vm0, %v385_v0  ;;  %v444_v1 = vsel (!%p301_p3), %vm442_vm0, %v385_v0, 0  ;;  %p356_p6 = scmp.lt.s32.totalorder (!%p301_p3), %s1516_s14, 15  ;;  %p366_p7 = scmp.lt.s32.totalorder (!%p301_p3), %s1711_s27, 1  ;;  %vm636_vm2 = vcmask (!%p301_p3), 122880   ;;  %v1729_v32 = vmov (!%p301_p3), 0.0   ;;  %v1672_v33 = vld [vmem:[%s2451_s6] sm:$0xff] (!%p301_p3)  }
   0xb   : > { %1606 = vmatpush3.bf16.msra.mxu1 (!%p301_p3), %v444_v1  ;;  %1588 = vmatpush3.bf16.msra.mxu0 (!%p301_p3), %v444_v1  ;;  %637 = vst.msk [vmem:[#allocation2 + $0x7] sm:$0x1] (!%p301_p3), %vm636_vm2, %v1729_v32  ;;  %638 = vst.msk [vmem:[#allocation2 + $0x27] sm:$0x1] (!%p301_p3), %vm636_vm2, %v1729_v32  ;;  %p624_p8 = scmp.gt.s32.totalorder (!%p301_p3), %s1711_s27, 0  ;;  %vm657_vm3 = vcmask (!%p301_p3), 130048  }
   0xc   : > { %639 = vst.msk [vmem:[#allocation2 + $0x47] sm:$0x1] (!%p301_p3), %vm636_vm2, %v1729_v32  ;;  %647 = vst.msk [vmem:[#allocation2 + $0x18] sm:$0x1] (!%p301_p3), %vm636_vm2, %v1729_v32  ;;  %1611 = vmatprep.subr.bf16.mxu1 (!%p301_p3), %v1672_v33  ;;  %v1881_v34 = vld [vmem:[%s2448_s3] ss:$0 sm:$0xff] (!%p301_p3) }
   0xd   : > { %648 = vst.msk [vmem:[#allocation2 + $0x38] sm:$0x1] (!%p301_p3), %vm636_vm2, %v1729_v32  ;;  %649 = vst.msk [vmem:[#allocation2 + $0x58] sm:$0x1] (!%p301_p3), %vm636_vm2, %v1729_v32  ;;  %v1900_v60 = vld [vmem:[%s2449_s4 + $0x8] ss:$0 sm:$0xff] (!%p301_p3) }
   0xe   : > { %640 = vst.msk [vmem:[#allocation2 + $0x67] sm:$0x1] (!%p301_p3), %vm636_vm2, %v1729_v32  ;;  %641 = vst.msk [vmem:[#allocation2 + $0x87] sm:$0x1] (!%p301_p3), %vm636_vm2, %v1729_v32  ;;  %v1907_v1 = vld [vmem:[%s2449_s4] ss:$0 sm:$0xff] (!%p301_p3) }
   0xf   : > { %642 = vst.msk [vmem:[#allocation2 + $0xa7] sm:$0x1] (!%p301_p3), %vm636_vm2, %v1729_v32  ;;  %643 = vst.msk [vmem:[#allocation2 + $0xc7] sm:$0x1] (!%p301_p3), %vm636_vm2, %v1729_v32 }
  0x10   : > { %s2465_s28 = smov (!%p354_p5, %s1715_s28), 1  ;;  %s2467_s14 = smov (!%p356_p6, %s1516_s14), 15  ;;  %644 = vst.msk [vmem:[#allocation2 + $0xe7] sm:$0x1] %vm636_vm2, %v1729_v32  ;;  %645 = vst.msk [vmem:[#allocation2 + $0x107] sm:$0x1] %vm636_vm2, %v1729_v32 }
  0x11   : > { %s1518_s15 = sshll.u32 %s2465_s28, 5  ;;  %s1517_s16 = sshll.u32 %s2467_s14, 1  ;;  %646 = vst.msk [vmem:[#allocation2 + $0x127] sm:$0x1] %vm636_vm2, %v1729_v32  ;;  %650 = vst.msk [vmem:[#allocation2 + $0x78] sm:$0x1] %vm636_vm2, %v1729_v32 }
  0x12   : > { %s1812_s17 = sadd.s32 %s1518_s15, %s1517_s16  ;;  %s1521_s22 = sshll.u32 %s2465_s28, 3  ;;  %651 = vst.msk [vmem:[#allocation2 + $0x98] sm:$0x1] %vm636_vm2, %v1729_v32  ;;  %652 = vst.msk [vmem:[#allocation2 + $0xb8] sm:$0x1] %vm636_vm2, %v1729_v32 }
  0x13   : > { %s1519_s18 = sshll.u32 %s1812_s17, 3  ;;  %653 = vst.msk [vmem:[#allocation2 + $0xd8] sm:$0x1] %vm636_vm2, %v1729_v32  ;;  %654 = vst.msk [vmem:[#allocation2 + $0xf8] sm:$0x1] %vm636_vm2, %v1729_v32 }
  0x14   : > { %s1820_s21 = scalar_lea.vmem %s2445_s0, %s1519_s18  ;;  %655 = vst.msk [vmem:[#allocation2 + $0x118] sm:$0x1] %vm636_vm2, %v1729_v32  ;;  %656 = vst.msk [vmem:[#allocation2 + $0x138] sm:$0x1] %vm636_vm2, %v1729_v32 }
  0x15   : > { %s367_s23 = scalar_select %p366_p7, %s1711_s27, 1  ;;  %v387_v2 = vld [vmem:[%s1820_s21] sm:$0xff]  ;;  %v388_v3 = vld [vmem:[%s1820_s21 + $0x8] sm:$0xff]  ;;  %v389_v4 = vld [vmem:[%s1820_s21 + $0x10] sm:$0xff] }
  0x16   : > { %v403_v5 = vpack.c.bf16 %v388_v3, %v387_v2  ;;  %v390_v6 = vld [vmem:[%s1820_s21 + $0x18] sm:$0xff]  ;;  %v391_v7 = vld [vmem:[%s1820_s21 + $0x20] sm:$0xff]  ;;  %v392_v8 = vld [vmem:[%s1820_s21 + $0x28] sm:$0xff]  ;;  %s631_s20 = scalar_select %p366_p7, 1, 0 }
  0x17   : > { %s1520_s24 = sshll.u32 %s367_s23, 2  ;;  %v404_v9 = vpack.c.bf16 %v390_v6, %v389_v4  ;;  %v405_v10 = vpack.c.bf16 %v392_v8, %v391_v7  ;;  %v393_v11 = vld [vmem:[%s1820_s21 + $0x30] sm:$0xff]  ;;  %v394_v12 = vld [vmem:[%s1820_s21 + $0x38] sm:$0xff]  ;;  %v395_v13 = vld [vmem:[%s1820_s21 + $0x40] sm:$0xff] }
  0x18   : > { %s370_s25 = sadd.s32 %s1521_s22, %s1520_s24  ;;  %1589 = vmatprep.mubr.msk.bf16.mxu0 %vm417_vm1, %v403_v5  ;;  %v396_v14 = vld [vmem:[%s1820_s21 + $0x48] sm:$0xff]  ;;  %v406_v21 = vpack.c.bf16 %v394_v12, %v393_v11  ;;  %v397_v23 = vld [vmem:[%s1820_s21 + $0x50] sm:$0xff]  ;;  %v398_v24 = vld [vmem:[%s1820_s21 + $0x58] sm:$0xff]  ;;  %s632_s23 = scvt.s32.f32 %s631_s20 }
  0x19   : > { %s1522_s26 = sshll.u32 %s370_s25, 3  ;;  %1590 = vmatmul.mubr.msk.bf16.vlgmr.msra.gmra.mrb[0].mxu0 %vm417_vm1, %v404_v9  ;;  %v407_v22 = vpack.c.bf16 %v396_v14, %v395_v13  ;;  %v399_v25 = vld [vmem:[%s1820_s21 + $0x60] sm:$0xff]  ;;  %v400_v26 = vld [vmem:[%s1820_s21 + $0x68] sm:$0xff]  ;;  %v408_v27 = vpack.c.bf16 %v398_v24, %v397_v23  ;;  %v401_v29 = vld [vmem:[%s1820_s21 + $0x70] sm:$0xff]  ;;  %s2368_s20 = scalar_lea.vmem %s2453_s8, %s1519_s18 }
  0x1a   : > { %s372_s13 = scalar_lea.vmem %s2446_s1, %s1522_s26  ;;  %1593 = vmatprep.mubr.msk.bf16.mxu0 %vm417_vm1, %v405_v10  ;;  %v409_v28 = vpack.c.bf16 %v400_v26, %v399_v25  ;;  %v402_v30 = vld [vmem:[%s1820_s21 + $0x78] sm:$0xff]  ;;  %v633_v50 = vstv %s632_s23  ;;  %v1912_v2 = vld [vmem:[%s2449_s4 + $0x4] ss:$0 sm:$0xff]  ;;  %v1917_v3 = vld [vmem:[%s2449_s4 + $0x9] ss:$0 sm:$0xff] }
  0x1b   : > { %v559_v15 = vld [vmem:[%s372_s13] sm:$0xff]  ;;  %v560_v16 = vld [vmem:[%s372_s13 + $0x8] sm:$0xff]  ;;  %v561_v17 = vld [vmem:[%s372_s13 + $0x10] sm:$0xff]  ;;  %v410_v31 = vpack.c.bf16 %v402_v30, %v401_v29  ;;  %s625_s22 = scalar_select %p624_p8, 1, 0 }
  0x1c   : > { %v563_v18 = vpack.c.bf16 %v560_v16, %v559_v15  ;;  %v562_v19 = vld [vmem:[%s372_s13 + $0x18] sm:$0xff]  ;;  %v1923_v9 = vld [vmem:[%s2449_s4 + $0x5] ss:$0 sm:$0xff]  ;;  %v1929_v14 = vld [vmem:[%s2449_s4 + $0x1] ss:$0 sm:$0xff] }
  0x1d   : > { %v564_v20 = vpack.c.bf16 %v562_v19, %v561_v17  ;;  %s626_s27 = scvt.s32.f32 %s625_s22  ;;  %v1938_v17 = vld [vmem:[%s2449_s4 + $0xa] ss:$0 sm:$0xff]  ;;  %v1950_v23 = vld [vmem:[%s2449_s4 + $0x6] ss:$0 sm:$0xff] }
  0x1e   : > { %1607 = vmatprep.mubr.msk.bf16.mxu1 %vm417_vm1, %v563_v18 }
  0x1f   : > { %1608 = vmatmul.mubr.msk.bf16.vlgmr.msra.gmra.mrb[0].mxu1 %vm417_vm1, %v564_v20  ;;  %v627_v55 = vstv %s626_s27  ;;  %v1945_v20 = vld [vmem:[%s2449_s4 + $0x2] ss:$0 sm:$0xff] }
  0x20   : > { %1612 = vmatpush3.bf16.msra.mxu1 %v1672_v33 }
  0x21   : > { %1594 = vmatmul.mubr.msk.bf16.gmra.mrb[4].mxu0 %vm417_vm1, %v406_v21 }
  0x22   : > { %1597 = vmatprep.mubr.msk.bf16.mxu0 %vm417_vm1, %v407_v22 }
  0x29   : > { %1598 = vmatmul.mubr.msk.bf16.gmra.mrb[8].mxu0 %vm417_vm1, %v408_v27 }
  0x2a   : > { %1601 = vmatprep.mubr.msk.bf16.mxu0 %vm417_vm1, %v409_v28 }
  0x31   : > { %1602 = vmatmul.mubr.msk.bf16.gmra.mrb[12].mxu0 %vm417_vm1, %v410_v31 }
  0xec   : > { %v1591_v35 = vpop.f32.mrb[0].mxu0 }
  0xed   : > { %v489_v36 = vadd.f32 %v1591_v35, %v1881_v34  ;;  %v480_v37 = vpop.f32.mrb[1].mxu0 }
  0xee   : > { %v481_v38 = vadd.f32 %v1881_v34, %v480_v37  ;;  %v1592_v39 = vpop.f32.mrb[2].mxu0 }
  0xef   : > { %v545_v40 = vmax.f32 %v489_v36, 0.0  ;;  %v492_v41 = vadd.f32 %v1592_v39, %v1881_v34  ;;  %v483_v42 = vpop.f32.mrb[3].mxu0 }
  0xf0   : > { %v543_v43 = vmax.f32 %v481_v38, 0.0  ;;  %v484_v44 = vadd.f32 %v1881_v34, %v483_v42 }
  0xf1   : > { %663 = vst.msk [vmem:[#allocation2 + $0x48] sm:$0xff] %vm657_vm3, %v545_v40  ;;  %v546_v45 = vmax.f32 %v492_v41, 0.0 }
  0xf2   : > { %v1609_v46 = vpop.f32.mrb[0].mxu1  ;;  %661 = vst.msk [vmem:[#allocation2 + $0x28] sm:$0xff] %vm657_vm3, %v543_v43  ;;  %v544_v47 = vmax.f32 %v484_v44, 0.0 }
  0xf3   : > { %v614_v48 = vadd.f32 %v1609_v46, %v1881_v34  ;;  %v605_v49 = vpop.f32.mrb[1].mxu1  ;;  %664 = vst.msk [vmem:[#allocation2 + $0x50] sm:$0xff] %vm657_vm3, %v546_v45 }
  0xf4   : > { %v606_v51 = vadd.f32 %v1881_v34, %v605_v49  ;;  %v1610_v52 = vpop.f32.mrb[2].mxu1  ;;  %662 = vst.msk [vmem:[#allocation2 + $0x30] sm:$0xff] %vm657_vm3, %v544_v47  ;;  %v1595_v53 = vpop.f32.mrb[4].mxu0 }
  0xf5   : > { %v622_v54 = vmax.f32 %v614_v48, 0.0  ;;  %v617_v56 = vadd.f32 %v1610_v52, %v1881_v34  ;;  %v608_v57 = vpop.f32.mrb[3].mxu1  ;;  %v505_v58 = vadd.f32 %v1595_v53, %v1881_v34  ;;  %v496_v59 = vpop.f32.mrb[5].mxu0 }
  0xf6   : > { %v620_v61 = vmax.f32 %v606_v51, 0.0  ;;  %v609_v62 = vadd.f32 %v1881_v34, %v608_v57  ;;  %v497_v63 = vadd.f32 %v1881_v34, %v496_v59  ;;  %v1596_v0 = vpop.f32.mrb[6].mxu0 }
  0xf7   : > { %v634_v4 = vmul.f32 %v633_v50, %v622_v54  ;;  %v623_v5 = vmax.f32 %v617_v56, 0.0  ;;  %v549_v6 = vmax.f32 %v505_v58, 0.0  ;;  %v508_v7 = vadd.f32 %v1596_v0, %v1881_v34  ;;  %v499_v8 = vpop.f32.mrb[7].mxu0 }
  0xf8   : > { %v628_v10 = vmul.f32 %v627_v55, %v620_v61  ;;  %v621_v11 = vmax.f32 %v609_v62, 0.0  ;;  %v547_v12 = vmax.f32 %v497_v63, 0.0  ;;  %v500_v13 = vadd.f32 %v1881_v34, %v499_v8  ;;  %v1931_v15 = vld [vmem:[#allocation2 + $0x47] sm:$0xff] }
  0xf9   : > { %v1933_v16 = vld [vmem:[#allocation2 + $0x48] sm:$0xff]  ;;  %678 = vst.msk [vmem:[#allocation2 + $0x128] sm:$0xff] %vm657_vm3, %v634_v4  ;;  %v635_v18 = vmul.f32 %v633_v50, %v623_v5  ;;  %667 = vst.msk [vmem:[#allocation2 + $0x88] sm:$0xff] %vm657_vm3, %v549_v6  ;;  %v550_v19 = vmax.f32 %v508_v7, 0.0  ;;  %v1954_v24 = vmul.f32 %v1900_v60, %v1931_v15  ;;  %v863_v63 = vmul.f32 %v1912_v2, %v1931_v15 }
  0xfa   : > { %v839_v21 = vld [vmem:[#allocation2 + $0x27] sm:$0xff]  ;;  %v1958_v25 = vmul.f32 %v1917_v3, %v1933_v16  ;;  %658 = vst.msk [vmem:[#allocation2 + $0x8] sm:$0xff] %vm657_vm3, %v628_v10  ;;  %v629_v26 = vmul.f32 %v627_v55, %v621_v11  ;;  %665 = vst.msk [vmem:[#allocation2 + $0x68] sm:$0xff] %vm657_vm3, %v547_v12  ;;  %v548_v27 = vmax.f32 %v500_v13, 0.0  ;;  %v1968_v30 = vld [vmem:[#allocation2 + $0x4f] sm:$0xff]  ;;  %v916_v12 = vmul.f32 %v1923_v9, %v1933_v16 }
  0xfb   : > { %v893_v22 = vld [vmem:[#allocation2 + $0x28] sm:$0xff]  ;;  %v1963_v28 = vmul.f32 %v1912_v2, %v839_v21  ;;  %v1970_v31 = vld [vmem:[#allocation2 + $0x50] sm:$0xff]  ;;  %679 = vst.msk [vmem:[#allocation2 + $0x130] sm:$0xff] %vm657_vm3, %v635_v18  ;;  %668 = vst.msk [vmem:[#allocation2 + $0x90] sm:$0xff] %vm657_vm3, %v550_v19  ;;  %v1978_v37 = vmul.f32 %v1900_v60, %v1968_v30  ;;  %v703_v40 = vmul.f32 %v1907_v1, %v839_v21 }
  0xfc   : > { %v1966_v29 = vmul.f32 %v1923_v9, %v893_v22  ;;  %v1972_v32 = vld [vmem:[#allocation2 + $0x49] sm:$0xff]  ;;  %v1982_v38 = vmul.f32 %v1917_v3, %v1970_v31  ;;  %659 = vst.msk [vmem:[#allocation2 + $0x10] sm:$0xff] %vm657_vm3, %v629_v26  ;;  %666 = vst.msk [vmem:[#allocation2 + $0x70] sm:$0xff] %vm657_vm3, %v548_v27  ;;  %v1599_v41 = vpop.f32.mrb[8].mxu0  ;;  %v947_v44 = vld [vmem:[#allocation2 + $0x31] sm:$0xff]  ;;  %v756_v52 = vmul.f32 %v1929_v14, %v893_v22 }
  0xfd   : > { %v840_v33 = vld [vmem:[#allocation2 + $0x2f] sm:$0xff]  ;;  %v1986_v39 = vmul.f32 %v1938_v17, %v1972_v32  ;;  %v521_v48 = vadd.f32 %v1599_v41, %v1881_v34  ;;  %v512_v49 = vpop.f32.mrb[9].mxu0  ;;  %v2005_v50 = vmul.f32 %v1950_v23, %v947_v44  ;;  %v810_v57 = vmul.f32 %v1945_v20, %v947_v44 }
  0xfe   : > { %v894_v35 = vld [vmem:[#allocation2 + $0x30] sm:$0xff]  ;;  %v1992_v42 = vmul.f32 %v1912_v2, %v840_v33  ;;  %v704_v47 = vmul.f32 %v1907_v1, %v840_v33  ;;  %v513_v53 = vadd.f32 %v1881_v34, %v512_v49  ;;  %v1600_v54 = vpop.f32.mrb[10].mxu0  ;;  %v772_v62 = vadd.f32 %v756_v52, %v703_v40 }
  0xff   : > { %v946_v36 = vld [vmem:[#allocation2 + $0x29] sm:$0xff]  ;;  %v1995_v43 = vmul.f32 %v1923_v9, %v894_v35  ;;  %v2000_v46 = vld [vmem:[#allocation2 + $0x51] sm:$0xff]  ;;  %v757_v55 = vmul.f32 %v1929_v14, %v894_v35  ;;  %v553_v58 = vmax.f32 %v521_v48, 0.0  ;;  %v524_v59 = vadd.f32 %v1600_v54, %v1881_v34  ;;  %v515_v61 = vpop.f32.mrb[11].mxu0 }
 0x100   : > { %v1998_v45 = vmul.f32 %v1950_v23, %v946_v36  ;;  %v2009_v51 = vmul.f32 %v1938_v17, %v2000_v46  ;;  %v809_v56 = vmul.f32 %v1945_v20, %v946_v36  ;;  %v551_v0 = vmax.f32 %v513_v53, 0.0 }
 0x101   : > { %v516_v4 = vadd.f32 %v1881_v34, %v515_v61  ;;  %v773_v5 = vadd.f32 %v757_v55, %v704_v47  ;;  %v864_v6 = vmul.f32 %v1912_v2, %v1968_v30  ;;  %671 = vst.msk [vmem:[#allocation2 + $0xc8] sm:$0xff] %vm657_vm3, %v553_v58  ;;  %v554_v7 = vmax.f32 %v524_v59, 0.0  ;;  %v680_v8 = vld [vmem:[#allocation2 + $0x7] sm:$0xff] }
 0x102   : > { %v733_v10 = vld [vmem:[#allocation2 + $0x8] sm:$0xff]  ;;  %v825_v11 = vadd.f32 %v809_v56, %v772_v62  ;;  %v917_v13 = vmul.f32 %v1923_v9, %v1970_v31  ;;  %669 = vst.msk [vmem:[#allocation2 + $0xa8] sm:$0xff] %vm657_vm3, %v551_v0  ;;  %v701_v21 = vmul.f32 %v1907_v1, %v680_v8  ;;  %v969_v40 = vmul.f32 %v1950_v23, %v1972_v32 }
 0x103   : > { %v2027_v18 = vld [vmem:[#allocation2 + $0x67] sm:$0xff]  ;;  %v552_v19 = vmax.f32 %v516_v4, 0.0  ;;  %v754_v22 = vmul.f32 %v1929_v14, %v733_v10  ;;  %v826_v26 = vadd.f32 %v810_v57, %v773_v5  ;;  %672 = vst.msk [vmem:[#allocation2 + $0xd0] sm:$0xff] %vm657_vm3, %v554_v7  ;;  %v681_v27 = vld [vmem:[#allocation2 + $0xf] sm:$0xff]  ;;  %v970_v41 = vmul.f32 %v1950_v23, %v2000_v46 }
 0x104   : > { %v734_v33 = vld [vmem:[#allocation2 + $0x10] sm:$0xff]  ;;  %v879_v36 = vadd.f32 %v863_v63, %v825_v11  ;;  %v1024_v44 = vmul.f32 %v1900_v60, %v2027_v18  ;;  %v1603_v47 = vpop.f32.mrb[12].mxu0  ;;  %v702_v48 = vmul.f32 %v1907_v1, %v681_v27  ;;  %v2050_v7 = vld [vmem:[#allocation2 + $0x68] sm:$0xff] }
 0x105   : > { %v786_v35 = vld [vmem:[#allocation2 + $0x9] sm:$0xff]  ;;  %670 = vst.msk [vmem:[#allocation2 + $0xb0] sm:$0xff] %vm657_vm3, %v552_v19  ;;  %v755_v49 = vmul.f32 %v1929_v14, %v734_v33  ;;  %v770_v52 = vadd.f32 %v754_v22, %v701_v21  ;;  %v787_v53 = vld [vmem:[#allocation2 + $0x11] sm:$0xff]  ;;  %v537_v56 = vadd.f32 %v1603_v47, %v1881_v34  ;;  %v528_v57 = vpop.f32.mrb[13].mxu0  ;;  %v880_v59 = vadd.f32 %v864_v6, %v826_v26 }
 0x106   : > { %v807_v54 = vmul.f32 %v1945_v20, %v786_v35  ;;  %v2043_v55 = vld [vmem:[#allocation2 + $0x6f] sm:$0xff]  ;;  %v808_v58 = vmul.f32 %v1945_v20, %v787_v53  ;;  %v932_v61 = vadd.f32 %v916_v12, %v879_v36  ;;  %v529_v62 = vadd.f32 %v1881_v34, %v528_v57  ;;  %v1604_v63 = vpop.f32.mrb[14].mxu0 }
 0x107   : > { %v771_v0 = vadd.f32 %v755_v49, %v702_v48  ;;  %v1025_v5 = vmul.f32 %v1900_v60, %v2043_v55  ;;  %v557_v8 = vmax.f32 %v537_v56, 0.0  ;;  %v540_v10 = vadd.f32 %v1604_v63, %v1881_v34  ;;  %v531_v11 = vpop.f32.mrb[15].mxu0  ;;  %v2053_v22 = vld [vmem:[#allocation2 + $0x70] sm:$0xff] }
 0x108   : > { %v823_v4 = vadd.f32 %v807_v54, %v770_v52  ;;  %v933_v19 = vadd.f32 %v917_v13, %v880_v59  ;;  %v985_v21 = vadd.f32 %v969_v40, %v932_v61  ;;  %v555_v6 = vmax.f32 %v529_v62, 0.0  ;;  %v2057_v33 = vld [vmem:[#allocation2 + $0x69] sm:$0xff]  ;;  %v2059_v35 = vld [vmem:[#allocation2 + $0x71] sm:$0xff] }
 0x109   : > { %v532_v12 = vadd.f32 %v1881_v34, %v531_v11  ;;  %v824_v26 = vadd.f32 %v808_v58, %v771_v0  ;;  %675 = vst.msk [vmem:[#allocation2 + $0x108] sm:$0xff] %vm657_vm3, %v557_v8  ;;  %v558_v36 = vmax.f32 %v540_v10, 0.0  ;;  %v1077_v13 = vmul.f32 %v1917_v3, %v2050_v7 }
 0x10a   : > { %v877_v27 = vadd.f32 %v1963_v28, %v823_v4  ;;  %v986_v47 = vadd.f32 %v970_v41, %v933_v19  ;;  %v1040_v48 = vadd.f32 %v1024_v44, %v985_v21  ;;  %673 = vst.msk [vmem:[#allocation2 + $0xe8] sm:$0xff] %vm657_vm3, %v555_v6  ;;  %v1078_v28 = vmul.f32 %v1917_v3, %v2053_v22  ;;  %v2110_v21 = vld [vmem:[#allocation2 + $0x8f] sm:$0xff] }
 0x10b   : > { %v556_v40 = vmax.f32 %v532_v12, 0.0  ;;  %v878_v34 = vadd.f32 %v1992_v42, %v824_v26  ;;  %676 = vst.msk [vmem:[#allocation2 + $0x110] sm:$0xff] %vm657_vm3, %v558_v36  ;;  %v1130_v41 = vmul.f32 %v1938_v17, %v2057_v33  ;;  %v1131_v44 = vmul.f32 %v1938_v17, %v2059_v35  ;;  %v2114_v36 = vld [vmem:[#allocation2 + $0x87] sm:$0xff] }
 0x10c   : > { %v930_v49 = vadd.f32 %v1966_v29, %v877_v27  ;;  %v1041_v52 = vadd.f32 %v1025_v5, %v986_v47  ;;  %v1093_v53 = vadd.f32 %v1077_v13, %v1040_v48  ;;  %v2080_v29 = vld [vmem:[%s2450_s5] ss:$0 sm:$0xff]  ;;  %v705_v56 = vmul.f32 %v1907_v1, %v1931_v15  ;;  %v2116_v47 = vld [vmem:[#allocation2 + $0x90] sm:$0xff] }
 0x10d   : > { %674 = vst.msk [vmem:[#allocation2 + $0xf0] sm:$0xff] %vm657_vm3, %v556_v40  ;;  %v931_v54 = vadd.f32 %v1995_v43, %v878_v34  ;;  %v706_v57 = vmul.f32 %v1907_v1, %v1968_v30  ;;  %v758_v61 = vmul.f32 %v1929_v14, %v1933_v16  ;;  %v759_v43 = vmul.f32 %v1929_v14, %v1970_v31  ;;  %v2124_v40 = vld [vmem:[#allocation2 + $0x89] sm:$0xff]  ;;  %v2126_v34 = vld [vmem:[#allocation2 + $0x91] sm:$0xff] }
 0x10e   : > { %v983_v42 = vadd.f32 %v1998_v45, %v930_v49  ;;  %v1094_v58 = vadd.f32 %v1078_v28, %v1041_v52  ;;  %v1146_v59 = vadd.f32 %v1130_v41, %v1093_v53  ;;  %v811_v63 = vmul.f32 %v1945_v20, %v1972_v32  ;;  %v1058_v41 = vld [vmem:[#allocation2 + $0x88] sm:$0xff] }
 0x10f   : > { %v984_v45 = vadd.f32 %v2005_v50, %v931_v54  ;;  %v812_v15 = vmul.f32 %v1945_v20, %v2000_v46  ;;  %v774_v4 = vadd.f32 %v758_v61, %v705_v56  ;;  %v775_v5 = vadd.f32 %v759_v43, %v706_v57 }
 0x110   : > { %v1038_v62 = vadd.f32 %v1954_v24, %v983_v42  ;;  %v1147_v0 = vadd.f32 %v1131_v44, %v1094_v58  ;;  %v1169_v30 = vadd.f32 %v2080_v29, %v1146_v59  ;;  %v865_v31 = vmul.f32 %v1912_v2, %v2027_v18 }
 0x111   : > { %v1039_v16 = vadd.f32 %v1978_v37, %v984_v45  ;;  %v866_v24 = vmul.f32 %v1912_v2, %v2043_v55  ;;  %v827_v10 = vadd.f32 %v811_v63, %v774_v4  ;;  %v828_v46 = vadd.f32 %v812_v15, %v775_v5 }
 0x112   : > { %v1091_v8 = vadd.f32 %v1958_v25, %v1038_v62  ;;  %v1170_v32 = vadd.f32 %v2080_v29, %v1147_v0  ;;  %v1185_v50 = vmax.f32 %v1169_v30, 0.0  ;;  %v918_v37 = vmul.f32 %v1923_v9, %v2050_v7 }
 0x113   : > { %v1092_v11 = vadd.f32 %v1982_v38, %v1039_v16  ;;  %v919_v25 = vmul.f32 %v1923_v9, %v2053_v22  ;;  %v881_v12 = vadd.f32 %v865_v31, %v827_v10  ;;  %v882_v26 = vadd.f32 %v866_v24, %v828_v46  ;;  %v2154_v24 = vld [vmem:[#allocation2 + $0xa7] sm:$0xff]  ;;  %v2166_v46 = vld [vmem:[#allocation2 + $0xb0] sm:$0xff] }
 0x114   : > { %v1144_v19 = vadd.f32 %v1986_v39, %v1091_v8  ;;  %v1186_v6 = vmax.f32 %v1170_v32, 0.0  ;;  %v971_v27 = vmul.f32 %v1950_v23, %v2057_v33  ;;  %v972_v48 = vmul.f32 %v1950_v23, %v2059_v35  ;;  %v2158_v32 = vld [vmem:[#allocation2 + $0xa8] sm:$0xff] }
 0x115   : > { %v1145_v38 = vadd.f32 %v2009_v51, %v1092_v11  ;;  %v1026_v13 = vmul.f32 %v1900_v60, %v2114_v36  ;;  %v934_v28 = vadd.f32 %v918_v37, %v881_v12  ;;  %v935_v52 = vadd.f32 %v919_v25, %v882_v26  ;;  %v2173_v12 = vld [vmem:[#allocation2 + $0xb1] sm:$0xff] }
 0x116   : > { %v1167_v39 = vadd.f32 %v2080_v29, %v1144_v19  ;;  %v1200_v49 = vpack.c.bf16 %v1186_v6, %v1185_v50  ;;  %v1027_v53 = vmul.f32 %v1900_v60, %v2110_v21  ;;  %v1079_v54 = vmul.f32 %v1917_v3, %v1058_v41  ;;  %v2171_v6 = vld [vmem:[#allocation2 + $0xa9] sm:$0xff] }
 0x117   : > { %v1168_v51 = vadd.f32 %v2080_v29, %v1145_v38  ;;  %v1080_v42 = vmul.f32 %v1917_v3, %v2116_v47  ;;  %v987_v56 = vadd.f32 %v971_v27, %v934_v28  ;;  %v988_v57 = vadd.f32 %v972_v48, %v935_v52 }
 0x118   : > { %v1183_v44 = vmax.f32 %v1167_v39, 0.0  ;;  %v1132_v58 = vmul.f32 %v1938_v17, %v2124_v40  ;;  %v1133_v59 = vmul.f32 %v1938_v17, %v2126_v34  ;;  %v707_v43 = vmul.f32 %v1907_v1, %v2027_v18 }
 0x119   : > { %v1184_v61 = vmax.f32 %v1168_v51, 0.0  ;;  %v708_v45 = vmul.f32 %v1907_v1, %v2043_v55  ;;  %v760_v62 = vmul.f32 %v1929_v14, %v2050_v7  ;;  %v1042_v63 = vadd.f32 %v1026_v13, %v987_v56 }
 0x11a   : > { %v1043_v15 = vadd.f32 %v1027_v53, %v988_v57  ;;  %v761_v0 = vmul.f32 %v1929_v14, %v2053_v22  ;;  %v813_v30 = vmul.f32 %v1945_v20, %v2057_v33  ;;  %v814_v16 = vmul.f32 %v1945_v20, %v2059_v35  ;;  %v2156_v22 = vld [vmem:[#allocation2 + $0xaf] sm:$0xff] }
 0x11b   : > { %v1199_v4 = vpack.c.bf16 %v1184_v61, %v1183_v44  ;;  %v776_v5 = vadd.f32 %v760_v62, %v707_v43  ;;  %v867_v18 = vmul.f32 %v1912_v2, %v2114_v36  ;;  %v1095_v55 = vadd.f32 %v1079_v54, %v1042_v63 }
 0x11c   : > { %v1096_v8 = vadd.f32 %v1080_v42, %v1043_v15  ;;  %v777_v31 = vadd.f32 %v761_v0, %v708_v45  ;;  %v868_v7 = vmul.f32 %v1912_v2, %v2110_v21  ;;  %v920_v35 = vmul.f32 %v1923_v9, %v1058_v41 }
 0x11d   : > { %1613 = vmatprep.mubr.msk.bf16.mxu1 %vm657_vm3, %v1199_v4  ;;  %v829_v33 = vadd.f32 %v813_v30, %v776_v5  ;;  %v921_v50 = vmul.f32 %v1923_v9, %v2116_v47  ;;  %v973_v10 = vmul.f32 %v1950_v23, %v2124_v40  ;;  %v1148_v11 = vadd.f32 %v1132_v58, %v1095_v55  ;;  %v2204_v30 = vld [vmem:[#allocation2 + $0xcf] sm:$0xff]  ;;  %v2213_v5 = vld [vmem:[#allocation2 + $0xc7] sm:$0xff] }
 0x11e   : > { %1614 = vmatmul.mubr.msk.bf16.vlgmr.msra.gmra.mrb[4].mxu1 %vm657_vm3, %v1200_v49  ;;  %v1149_v19 = vadd.f32 %v1133_v59, %v1096_v8  ;;  %v830_v37 = vadd.f32 %v814_v16, %v777_v31  ;;  %v974_v25 = vmul.f32 %v1950_v23, %v2126_v34  ;;  %v1028_v27 = vmul.f32 %v1900_v60, %v2154_v24  ;;  %v2215_v16 = vld [vmem:[#allocation2 + $0xd0] sm:$0xff] }
 0x11f   : > { %v883_v26 = vadd.f32 %v867_v18, %v829_v33  ;;  %v1029_v38 = vmul.f32 %v1900_v60, %v2156_v22  ;;  %v1081_v39 = vmul.f32 %v1917_v3, %v2158_v32  ;;  %v1171_v48 = vadd.f32 %v2080_v29, %v1148_v11  ;;  %v2221_v33 = vld [vmem:[#allocation2 + $0xc9] sm:$0xff] }
 0x120   : > { %v1172_v13 = vadd.f32 %v2080_v29, %v1149_v19  ;;  %v884_v49 = vadd.f32 %v868_v7, %v830_v37  ;;  %v1082_v28 = vmul.f32 %v1917_v3, %v2166_v46  ;;  %v1134_v53 = vmul.f32 %v1938_v17, %v2171_v6  ;;  %v2219_v7 = vld [vmem:[#allocation2 + $0xc8] sm:$0xff] }
 0x121   : > { %v936_v52 = vadd.f32 %v920_v35, %v883_v26  ;;  %v1135_v51 = vmul.f32 %v1938_v17, %v2173_v12  ;;  %v709_v44 = vmul.f32 %v1907_v1, %v2114_v36  ;;  %v1187_v54 = vmax.f32 %v1171_v48, 0.0  ;;  %v2223_v35 = vld [vmem:[#allocation2 + $0xd1] sm:$0xff] }
 0x122   : > { %v1188_v42 = vmax.f32 %v1172_v13, 0.0  ;;  %v937_v56 = vadd.f32 %v921_v50, %v884_v49  ;;  %v710_v57 = vmul.f32 %v1907_v1, %v2110_v21  ;;  %v762_v59 = vmul.f32 %v1929_v14, %v1058_v41 }
 0x123   : > { %v989_v58 = vadd.f32 %v973_v10, %v936_v52  ;;  %v763_v61 = vmul.f32 %v1929_v14, %v2116_v47  ;;  %v815_v43 = vmul.f32 %v1945_v20, %v2124_v40  ;;  %v816_v36 = vmul.f32 %v1945_v20, %v2126_v34 }
 0x124   : > { %v1201_v45 = vpack.c.bf16 %v1188_v42, %v1187_v54  ;;  %v990_v62 = vadd.f32 %v974_v25, %v937_v56  ;;  %v869_v63 = vmul.f32 %v1912_v2, %v2154_v24  ;;  %v778_v0 = vadd.f32 %v762_v59, %v709_v44 }
 0x125   : > { %v1044_v15 = vadd.f32 %v1028_v27, %v989_v58  ;;  %v779_v21 = vadd.f32 %v763_v61, %v710_v57  ;;  %v870_v41 = vmul.f32 %v1912_v2, %v2156_v22  ;;  %v922_v40 = vmul.f32 %v1923_v9, %v2158_v32 }
 0x126   : > { %1617 = vmatprep.mubr.msk.bf16.mxu1 %vm657_vm3, %v1201_v45  ;;  %v1045_v47 = vadd.f32 %v1029_v38, %v990_v62  ;;  %v923_v34 = vmul.f32 %v1923_v9, %v2166_v46  ;;  %v975_v4 = vmul.f32 %v1950_v23, %v2171_v6  ;;  %v831_v55 = vadd.f32 %v815_v43, %v778_v0  ;;  %v2257_v62 = vld [vmem:[#allocation2 + $0xe7] sm:$0xff] }
 0x127   : > { %v1097_v18 = vadd.f32 %v1081_v39, %v1044_v15  ;;  %v832_v8 = vadd.f32 %v816_v36, %v779_v21  ;;  %v976_v31 = vmul.f32 %v1950_v23, %v2173_v12  ;;  %v1030_v10 = vmul.f32 %v1900_v60, %v2213_v5  ;;  %v2259_v36 = vld [vmem:[#allocation2 + $0xef] sm:$0xff] }
 0x128   : > { %v1098_v50 = vadd.f32 %v1082_v28, %v1045_v47  ;;  %v1031_v11 = vmul.f32 %v1900_v60, %v2204_v30  ;;  %v1083_v19 = vmul.f32 %v1917_v3, %v2219_v7  ;;  %v885_v25 = vadd.f32 %v869_v63, %v831_v55  ;;  %v2263_v21 = vld [vmem:[#allocation2 + $0xe8] sm:$0xff]  ;;  %v2273_v55 = vld [vmem:[#allocation2 + $0xf1] sm:$0xff] }
 0x129   : > { %v1150_v37 = vadd.f32 %v1134_v53, %v1097_v18  ;;  %v886_v26 = vadd.f32 %v870_v41, %v832_v8  ;;  %v1084_v27 = vmul.f32 %v1917_v3, %v2215_v16  ;;  %v1136_v39 = vmul.f32 %v1938_v17, %v2221_v33  ;;  %v2265_v41 = vld [vmem:[#allocation2 + $0xf0] sm:$0xff] }
 0x12a   : > { %v1151_v38 = vadd.f32 %v1135_v51, %v1098_v50  ;;  %v1137_v48 = vmul.f32 %v1938_v17, %v2223_v35  ;;  %v711_v13 = vmul.f32 %v1907_v1, %v2154_v24  ;;  %v938_v28 = vadd.f32 %v922_v40, %v885_v25  ;;  %v2271_v18 = vld [vmem:[#allocation2 + $0xe9] sm:$0xff] }
 0x12b   : > { %v1173_v49 = vadd.f32 %v2080_v29, %v1150_v37  ;;  %v939_v52 = vadd.f32 %v923_v34, %v886_v26  ;;  %v712_v53 = vmul.f32 %v1907_v1, %v2156_v22  ;;  %v764_v51 = vmul.f32 %v1929_v14, %v2158_v32 }
 0x12c   : > { %v1174_v44 = vadd.f32 %v2080_v29, %v1151_v38  ;;  %v765_v54 = vmul.f32 %v1929_v14, %v2166_v46  ;;  %v817_v42 = vmul.f32 %v1945_v20, %v2171_v6  ;;  %v991_v24 = vadd.f32 %v975_v4, %v938_v28 }
 0x12d   : > { %v1189_v56 = vmax.f32 %v1173_v49, 0.0  ;;  %v992_v57 = vadd.f32 %v976_v31, %v939_v52  ;;  %v818_v58 = vmul.f32 %v1945_v20, %v2173_v12  ;;  %v780_v61 = vadd.f32 %v764_v51, %v711_v13 }
 0x12e   : > { %v1190_v59 = vmax.f32 %v1174_v44, 0.0  ;;  %v781_v22 = vadd.f32 %v765_v54, %v712_v53  ;;  %v871_v43 = vmul.f32 %v1912_v2, %v2213_v5  ;;  %v1046_v45 = vadd.f32 %v1030_v10, %v991_v24 }
 0x12f   : > { %v1047_v32 = vadd.f32 %v1031_v11, %v992_v57  ;;  %v872_v46 = vmul.f32 %v1912_v2, %v2204_v30  ;;  %v924_v6 = vmul.f32 %v1923_v9, %v2219_v7  ;;  %v833_v12 = vadd.f32 %v817_v42, %v780_v61 }
 0x130   : > { %v1202_v63 = vpack.c.bf16 %v1190_v59, %v1189_v56  ;;  %v834_v15 = vadd.f32 %v818_v58, %v781_v22  ;;  %v925_v0 = vmul.f32 %v1923_v9, %v2215_v16  ;;  %v1099_v47 = vadd.f32 %v1083_v19, %v1046_v45 }
 0x131   : > { %v1100_v40 = vadd.f32 %v1084_v27, %v1047_v32  ;;  %v977_v34 = vmul.f32 %v1950_v23, %v2221_v33  ;;  %v978_v4 = vmul.f32 %v1950_v23, %v2223_v35  ;;  %v887_v8 = vadd.f32 %v871_v43, %v833_v12  ;;  %v1012_v32 = vld [vmem:[#allocation2 + $0x107] sm:$0xff] }
 0x132   : > { %1618 = vmatmul.mubr.msk.bf16.gmra.mrb[8].mxu1 %vm657_vm3, %v1202_v63  ;;  %v888_v31 = vadd.f32 %v872_v46, %v834_v15  ;;  %v1032_v50 = vmul.f32 %v1900_v60, %v2257_v62  ;;  %v1033_v10 = vmul.f32 %v1900_v60, %v2259_v36  ;;  %v1152_v11 = vadd.f32 %v1136_v39, %v1099_v47  ;;  %v1013_v15 = vld [vmem:[#allocation2 + $0x10f] sm:$0xff] }
 0x133   : > { %v1153_v19 = vadd.f32 %v1137_v48, %v1100_v40  ;;  %v1085_v37 = vmul.f32 %v1917_v3, %v2263_v21  ;;  %v1086_v25 = vmul.f32 %v1917_v3, %v2265_v41  ;;  %v940_v26 = vadd.f32 %v924_v6, %v887_v8 }
 0x134   : > { %v941_v27 = vadd.f32 %v925_v0, %v888_v31  ;;  %v1138_v38 = vmul.f32 %v1938_v17, %v2271_v18  ;;  %v1139_v13 = vmul.f32 %v1938_v17, %v2273_v55  ;;  %v1175_v49 = vadd.f32 %v2080_v29, %v1152_v11  ;;  %v1067_v11 = vld [vmem:[#allocation2 + $0x110] sm:$0xff] }
 0x135   : > { %v1176_v28 = vadd.f32 %v2080_v29, %v1153_v19  ;;  %v713_v39 = vmul.f32 %v1907_v1, %v2213_v5  ;;  %v714_v48 = vmul.f32 %v1907_v1, %v2204_v30  ;;  %v993_v52 = vadd.f32 %v977_v34, %v940_v26 }
 0x136   : > { %v994_v53 = vadd.f32 %v978_v4, %v941_v27  ;;  %v766_v44 = vmul.f32 %v1929_v14, %v2219_v7  ;;  %v767_v51 = vmul.f32 %v1929_v14, %v2215_v16  ;;  %v1191_v54 = vmax.f32 %v1175_v49, 0.0 }
 0x137   : > { %v1192_v42 = vmax.f32 %v1176_v28, 0.0  ;;  %v819_v56 = vmul.f32 %v1945_v20, %v2221_v33  ;;  %v820_v24 = vmul.f32 %v1945_v20, %v2223_v35  ;;  %v1048_v5 = vadd.f32 %v1032_v50, %v993_v52  ;;  %v1066_v50 = vld [vmem:[#allocation2 + $0x108] sm:$0xff] }
 0x138   : > { %v1049_v57 = vadd.f32 %v1033_v10, %v994_v53  ;;  %v782_v58 = vadd.f32 %v766_v44, %v713_v39  ;;  %v783_v30 = vadd.f32 %v767_v51, %v714_v48  ;;  %v873_v61 = vmul.f32 %v1912_v2, %v2257_v62  ;;  %v1119_v28 = vld [vmem:[#allocation2 + $0x109] sm:$0xff]  ;;  %v1120_v39 = vld [vmem:[#allocation2 + $0x111] sm:$0xff] }
 0x139   : > { %v1203_v59 = vpack.c.bf16 %v1192_v42, %v1191_v54  ;;  %v874_v7 = vmul.f32 %v1912_v2, %v2259_v36  ;;  %v926_v16 = vmul.f32 %v1923_v9, %v2263_v21  ;;  %v1101_v22 = vadd.f32 %v1085_v37, %v1048_v5 }
 0x13a   : > { %v1102_v43 = vadd.f32 %v1086_v25, %v1049_v57  ;;  %v835_v33 = vadd.f32 %v819_v56, %v782_v58  ;;  %v836_v45 = vadd.f32 %v820_v24, %v783_v30  ;;  %v927_v35 = vmul.f32 %v1923_v9, %v2265_v41 }
 0x13b   : > { %1621 = vmatprep.mubr.msk.bf16.mxu1 %vm657_vm3, %v1203_v59  ;;  %v1154_v46 = vadd.f32 %v1138_v38, %v1101_v22  ;;  %v979_v0 = vmul.f32 %v1950_v23, %v2271_v18  ;;  %v980_v47 = vmul.f32 %v1950_v23, %v2273_v55  ;;  %v1034_v40 = vmul.f32 %v1900_v60, %v1012_v32 }
 0x13c   : > { %v1155_v6 = vadd.f32 %v1139_v13, %v1102_v43  ;;  %v889_v63 = vadd.f32 %v873_v61, %v835_v33  ;;  %v890_v12 = vadd.f32 %v874_v7, %v836_v45  ;;  %v1035_v10 = vmul.f32 %v1900_v60, %v1013_v15  ;;  %v1015_v33 = vld [vmem:[#allocation2 + $0x12f] sm:$0xff] }
 0x13d   : > { %v1177_v34 = vadd.f32 %v2080_v29, %v1154_v46  ;;  %v715_v19 = vmul.f32 %v1907_v1, %v2257_v62  ;;  %v716_v37 = vmul.f32 %v1907_v1, %v2259_v36  ;;  %v768_v25 = vmul.f32 %v1929_v14, %v2263_v21  ;;  %v1068_v45 = vld [vmem:[#allocation2 + $0x128] sm:$0xff] }
 0x13e   : > { %v1178_v4 = vadd.f32 %v2080_v29, %v1155_v6  ;;  %v942_v8 = vadd.f32 %v926_v16, %v889_v63  ;;  %v943_v31 = vadd.f32 %v927_v35, %v890_v12  ;;  %v1087_v49 = vmul.f32 %v1917_v3, %v1066_v50  ;;  %v1069_v12 = vld [vmem:[#allocation2 + $0x130] sm:$0xff] }
 0x13f   : > { %v1193_v26 = vmax.f32 %v1177_v34, 0.0  ;;  %v769_v48 = vmul.f32 %v1929_v14, %v2265_v41  ;;  %v784_v52 = vadd.f32 %v768_v25, %v715_v19  ;;  %v821_v62 = vmul.f32 %v1945_v20, %v2271_v18 }
 0x140   : > { %v1194_v27 = vmax.f32 %v1178_v4, 0.0  ;;  %v995_v38 = vadd.f32 %v979_v0, %v942_v8  ;;  %v996_v13 = vadd.f32 %v980_v47, %v943_v31  ;;  %v1088_v21 = vmul.f32 %v1917_v3, %v1067_v11  ;;  %v1122_v4 = vld [vmem:[#allocation2 + $0x131] sm:$0xff] }
 0x141   : > { %v785_v44 = vadd.f32 %v769_v48, %v716_v37  ;;  %v822_v51 = vmul.f32 %v1945_v20, %v2273_v55  ;;  %v837_v54 = vadd.f32 %v821_v62, %v784_v52  ;;  %v875_v42 = vmul.f32 %v1912_v2, %v1012_v32  ;;  %v1014_v20 = vld [vmem:[#allocation2 + $0x127] sm:$0xff] }
 0x142   : > { %v1204_v53 = vpack.c.bf16 %v1194_v27, %v1193_v26  ;;  %v1050_v1 = vadd.f32 %v1034_v40, %v995_v38  ;;  %v1051_v36 = vadd.f32 %v1035_v10, %v996_v13  ;;  %v1140_v41 = vmul.f32 %v1938_v17, %v1119_v28  ;;  %v2357_v38 = vld [vmem:[%s2452_s7] ss:$0 sm:$0xff] }
 0x143   : > { %v1141_v18 = vmul.f32 %v1938_v17, %v1120_v39  ;;  %v838_v24 = vadd.f32 %v822_v51, %v785_v44  ;;  %v876_v5 = vmul.f32 %v1912_v2, %v1013_v15  ;;  %v891_v57 = vadd.f32 %v875_v42, %v837_v54  ;;  %v1121_v15 = vld [vmem:[#allocation2 + $0x129] sm:$0xff]  ;;  %v1675_v44 = vld [vmem:[%s1820_s21 + $0x18] sm:$0xff] }
 0x144   : > { %1622 = vmatmul.mubr.msk.bf16.gmra.mrb[12].mxu1 %vm657_vm3, %v1204_v53  ;;  %v1103_v56 = vadd.f32 %v1087_v49, %v1050_v1  ;;  %v1104_v14 = vadd.f32 %v1088_v21, %v1051_v36  ;;  %v928_v58 = vmul.f32 %v1923_v9, %v1066_v50  ;;  %v929_v61 = vmul.f32 %v1923_v9, %v1067_v11  ;;  %v1674_v53 = vld [vmem:[%s1820_s21] sm:$0xff]  ;;  %v1676_v42 = vld [vmem:[%s1820_s21 + $0x8] sm:$0xff] }
 0x145   : > { %v892_v55 = vadd.f32 %v876_v5, %v838_v24  ;;  %v981_v16 = vmul.f32 %v1950_v23, %v1119_v28  ;;  %v982_v2 = vmul.f32 %v1950_v23, %v1120_v39  ;;  %v1036_v46 = vmul.f32 %v1900_v60, %v1014_v20  ;;  %v1673_v39 = vld [vmem:[%s1820_s21 + $0x10] sm:$0xff] }
 0x146   : > { %v1156_v30 = vadd.f32 %v1140_v41, %v1103_v56  ;;  %v1157_v59 = vadd.f32 %v1141_v18, %v1104_v14  ;;  %v944_v7 = vadd.f32 %v928_v58, %v891_v57  ;;  %v1037_v0 = vmul.f32 %v1900_v60, %v1015_v33 }
 0x147   : > { %v945_v32 = vadd.f32 %v929_v61, %v892_v55  ;;  %v1089_v40 = vmul.f32 %v1917_v3, %v1068_v45  ;;  %v1090_v31 = vmul.f32 %v1917_v3, %v1069_v12  ;;  %v1142_v23 = vmul.f32 %v1938_v17, %v1121_v15  ;;  %v1678_v61 = vld [vmem:[%s1820_s21 + $0x20] sm:$0xff] }
 0x148   : > { %v1179_v22 = vadd.f32 %v2080_v29, %v1156_v30  ;;  %v1180_v43 = vadd.f32 %v2080_v29, %v1157_v59  ;;  %v997_v35 = vadd.f32 %v981_v16, %v944_v7  ;;  %v1143_v11 = vmul.f32 %v1938_v17, %v1122_v4  ;;  %v1677_v30 = vld [vmem:[%s1820_s21 + $0x30] sm:$0xff]  ;;  %v1682_v4 = vld [vmem:[%s1820_s21 + $0x40] sm:$0xff] }
 0x149   : > { %v998_v9 = vadd.f32 %v982_v2, %v945_v32  ;;  %v1680_v32 = vld [vmem:[%s1820_s21 + $0x28] sm:$0xff] }
 0x14a   : > { %v1195_v6 = vmax.f32 %v1179_v22, 0.0  ;;  %v1196_v63 = vmax.f32 %v1180_v43, 0.0  ;;  %v1052_v47 = vadd.f32 %v1036_v46, %v997_v35  ;;  %v1679_v43 = vld [vmem:[%s1820_s21 + $0x38] sm:$0xff] }
 0x14b   : > { %v1053_v8 = vadd.f32 %v1037_v0, %v998_v9  ;;  %v1681_v0 = vld [vmem:[%s1820_s21 + $0x50] sm:$0xff] }
 0x14c   : > { %v1205_v34 = vpack.c.bf16 %v1196_v63, %v1195_v6  ;;  %v1105_v50 = vadd.f32 %v1089_v40, %v1052_v47 }
 0x14d   : > { %v1106_v10 = vadd.f32 %v1090_v31, %v1053_v8 }
 0x14e   : > { %1625 = vmatprep.mubr.msk.bf16.mxu1 %vm657_vm3, %v1205_v34  ;;  %v1158_v19 = vadd.f32 %v1142_v23, %v1105_v50  ;;  %v1683_v23 = vld [vmem:[%s1820_s21 + $0x58] sm:$0xff] }
 0x14f   : > { %v1159_v37 = vadd.f32 %v1143_v11, %v1106_v10 }
 0x150   : > { %v1181_v60 = vadd.f32 %v2080_v29, %v1158_v19  ;;  %v1684_v19 = vld [vmem:[%s1820_s21 + $0x48] sm:$0xff] }
 0x151   : > { %v1182_v25 = vadd.f32 %v2080_v29, %v1159_v37 }
 0x152   : > { %v1197_v26 = vmax.f32 %v1181_v60, 0.0 }
 0x153   : > { %v1198_v27 = vmax.f32 %v1182_v25, 0.0 }
 0x155   : > { %v1206_v3 = vpack.c.bf16 %v1198_v27, %v1197_v26 }
 0x157   : > { %1626 = vmatmul.mubr.msk.bf16.gmra.mrb[16].mxu1 %vm657_vm3, %v1206_v3 }
 0x1f1   : > { %v1615_v17 = vpop.f32.mrb[4].mxu1 }
 0x1f2   : > { %v1289_v13 = vadd.f32 %v1615_v17, %v2357_v38  ;;  %v1280_v49 = vpop.f32.mrb[5].mxu1 }
 0x1f3   : > { %v1281_v28 = vadd.f32 %v2357_v38, %v1280_v49  ;;  %v1616_v29 = vpop.f32.mrb[6].mxu1  ;;  %v1685_v49 = vld [vmem:[%s1820_s21 + $0x70] sm:$0xff] }
 0x1f4   : > { %v1345_v48 = vadd.f32 %v1673_v39, %v1289_v13  ;;  %v1292_v52 = vadd.f32 %v1616_v29, %v2357_v38  ;;  %v1283_v62 = vpop.f32.mrb[7].mxu1 }
 0x1f5   : > { %v1343_v1 = vadd.f32 %v1674_v53, %v1281_v28  ;;  %v1284_v36 = vadd.f32 %v2357_v38, %v1283_v62 }
 0x1f6   : > { %v1361_v21 = vmax.f32 %v1345_v48, 0.0  ;;  %v1346_v51 = vadd.f32 %v1675_v44, %v1292_v52  ;;  %v1686_v48 = vld [vmem:[%s1820_s21 + $0x60] sm:$0xff]  ;;  %v1688_v44 = vld [vmem:[%s1820_s21 + $0x68] sm:$0xff] }
 0x1f7   : > { %v1359_v54 = vmax.f32 %v1343_v1, 0.0  ;;  %v1344_v56 = vadd.f32 %v1676_v42, %v1284_v36  ;;  %v1687_v1 = vld [vmem:[%s1820_s21 + $0x78] sm:$0xff] }
 0x1f8   : > { %1377 = vst.msk [vmem:[%s2368_s20 + $0x10] sm:$0xff] %vm417_vm1, %v1361_v21  ;;  %v1362_v14 = vmax.f32 %v1346_v51, 0.0 }
 0x1f9   : > { %1375 = vst.msk [vmem:[%s2368_s20] sm:$0xff] %vm417_vm1, %v1359_v54  ;;  %v1360_v41 = vmax.f32 %v1344_v56, 0.0 }
 0x1fa   : > { %1378 = vst.msk [vmem:[%s2368_s20 + $0x18] sm:$0xff] %vm417_vm1, %v1362_v14 }
 0x1fb   : > { %1376 = vst.msk [vmem:[%s2368_s20 + $0x8] sm:$0xff] %vm417_vm1, %v1360_v41 }
 0x205   : > { %v1619_v18 = vpop.f32.mrb[8].mxu1 }
 0x206   : > { %v1305_v24 = vadd.f32 %v1619_v18, %v2357_v38  ;;  %v1296_v5 = vpop.f32.mrb[9].mxu1 }
 0x207   : > { %v1297_v57 = vadd.f32 %v2357_v38, %v1296_v5  ;;  %v1620_v58 = vpop.f32.mrb[10].mxu1 }
 0x208   : > { %v1349_v59 = vadd.f32 %v1677_v30, %v1305_v24  ;;  %v1308_v20 = vadd.f32 %v1620_v58, %v2357_v38  ;;  %v1299_v55 = vpop.f32.mrb[11].mxu1 }
 0x209   : > { %v1347_v7 = vadd.f32 %v1678_v61, %v1297_v57  ;;  %v1300_v16 = vadd.f32 %v2357_v38, %v1299_v55 }
 0x20a   : > { %v1365_v22 = vmax.f32 %v1349_v59, 0.0  ;;  %v1350_v33 = vadd.f32 %v1679_v43, %v1308_v20 }
 0x20b   : > { %v1363_v45 = vmax.f32 %v1347_v7, 0.0  ;;  %v1348_v2 = vadd.f32 %v1680_v32, %v1300_v16 }
 0x20c   : > { %1381 = vst.msk [vmem:[%s2368_s20 + $0x30] sm:$0xff] %vm417_vm1, %v1365_v22  ;;  %v1366_v35 = vmax.f32 %v1350_v33, 0.0 }
 0x20d   : > { %1379 = vst.msk [vmem:[%s2368_s20 + $0x20] sm:$0xff] %vm417_vm1, %v1363_v45  ;;  %v1364_v46 = vmax.f32 %v1348_v2, 0.0 }
 0x20e   : > { %1382 = vst.msk [vmem:[%s2368_s20 + $0x38] sm:$0xff] %vm417_vm1, %v1366_v35 }
 0x20f   : > { %1380 = vst.msk [vmem:[%s2368_s20 + $0x28] sm:$0xff] %vm417_vm1, %v1364_v46 }
 0x217   : > { %v1623_v6 = vpop.f32.mrb[12].mxu1 }
 0x218   : > { %v1321_v63 = vadd.f32 %v1623_v6, %v2357_v38  ;;  %v1312_v12 = vpop.f32.mrb[13].mxu1 }
 0x219   : > { %v1313_v15 = vadd.f32 %v2357_v38, %v1312_v12  ;;  %v1624_v9 = vpop.f32.mrb[14].mxu1 }
 0x21a   : > { %v1353_v47 = vadd.f32 %v1681_v0, %v1321_v63  ;;  %v1324_v40 = vadd.f32 %v1624_v9, %v2357_v38  ;;  %v1315_v34 = vpop.f32.mrb[15].mxu1 }
 0x21b   : > { %v1351_v8 = vadd.f32 %v1682_v4, %v1313_v15  ;;  %v1316_v31 = vadd.f32 %v2357_v38, %v1315_v34 }
 0x21c   : > { %v1369_v50 = vmax.f32 %v1353_v47, 0.0  ;;  %v1354_v10 = vadd.f32 %v1683_v23, %v1324_v40 }
 0x21d   : > { %v1367_v11 = vmax.f32 %v1351_v8, 0.0  ;;  %v1352_v37 = vadd.f32 %v1684_v19, %v1316_v31 }
 0x21e   : > { %1385 = vst.msk [vmem:[%s2368_s20 + $0x50] sm:$0xff] %vm417_vm1, %v1369_v50  ;;  %v1370_v60 = vmax.f32 %v1354_v10, 0.0 }
 0x21f   : > { %1383 = vst.msk [vmem:[%s2368_s20 + $0x40] sm:$0xff] %vm417_vm1, %v1367_v11  ;;  %v1368_v25 = vmax.f32 %v1352_v37, 0.0 }
 0x220   : > { %1386 = vst.msk [vmem:[%s2368_s20 + $0x58] sm:$0xff] %vm417_vm1, %v1370_v60 }
 0x221   : > { %1384 = vst.msk [vmem:[%s2368_s20 + $0x48] sm:$0xff] %vm417_vm1, %v1368_v25 }
 0x22a   : > { %v1627_v26 = vpop.f32.mrb[16].mxu1 }
 0x22b   : > { %v1337_v27 = vadd.f32 %v1627_v26, %v2357_v38  ;;  %v1328_v3 = vpop.f32.mrb[17].mxu1 }
 0x22c   : > { %v1329_v17 = vadd.f32 %v2357_v38, %v1328_v3  ;;  %v1628_v13 = vpop.f32.mrb[18].mxu1 }
 0x22d   : > { %v1357_v28 = vadd.f32 %v1685_v49, %v1337_v27  ;;  %v1340_v29 = vadd.f32 %v1628_v13, %v2357_v38  ;;  %v1331_v39 = vpop.f32.mrb[19].mxu1 }
 0x22e   : > { %v1355_v52 = vadd.f32 %v1686_v48, %v1329_v17  ;;  %v1332_v62 = vadd.f32 %v2357_v38, %v1331_v39 }
 0x22f   : > { %v1373_v53 = vmax.f32 %v1357_v28, 0.0  ;;  %v1358_v36 = vadd.f32 %v1687_v1, %v1340_v29 }
 0x230   : > { %v1371_v21 = vmax.f32 %v1355_v52, 0.0  ;;  %v1356_v51 = vadd.f32 %v1688_v44, %v1332_v62 }
 0x231   : > { %1389 = vst.msk [vmem:[%s2368_s20 + $0x70] sm:$0xff] %vm417_vm1, %v1373_v53  ;;  %v1374_v54 = vmax.f32 %v1358_v36, 0.0 }
 0x232   : > { %1387 = vst.msk [vmem:[%s2368_s20 + $0x60] sm:$0xff] %vm417_vm1, %v1371_v21  ;;  %v1372_v42 = vmax.f32 %v1356_v51, 0.0 }
 0x233   : > { %1390 = vst.msk [vmem:[%s2368_s20 + $0x78] sm:$0xff] %vm417_vm1, %v1374_v54 }
 0x234   : > { %1388 = vst.msk [vmem:[%s2368_s20 + $0x68] sm:$0xff] %vm417_vm1, %v1372_v42 }
 0x235 PF: > { %s18_s9 = sadd.s32 1, %s1727_s9   ;;  %s2454_s27 = smov %s1719_s29 }
 0x236   : > { %p15_p9 = scmp.ge.s32.totalorder %s18_s9, 6   ;;  %s2455_s28 = smov %s1723_s30 }
 0x237   : > { %s2456_s29 = smov %s2459_s10  ;;  %s2457_s30 = smov %s2463_s11 }
 0x238   :  { %17 = sbr.rel (!%p15_p9) target bundleno = 3 (0x3), region = 90 }

</bundles_post_ra>
